<compile_context>
chip_gen: v7x
topology: tpu7x:2x2x1
jax: 0.10.0
libtpu: 0.0.40
codegen_flags: <defaults>
</compile_context>

<pallas_src>
import jax
import jax.numpy as jnp
from jax import lax
from jax.experimental import pallas as pl
from jax.experimental.pallas import tpu as pltpu


def _vmem_capacity_bytes():
    # Generation-aware VMEM: v5e/v6e have 128 MiB per TensorCore, v7x has 64 MiB.
    try:
        return int(pltpu.get_tpu_info().vmem_capacity_bytes)
    except Exception:  # query unavailable -> assume the smallest (v7x)
        return 64 << 20


def _tile_and_vmem_limit(n, d):
    cap = _vmem_capacity_bytes()
    # ~40% of physical VMEM for the two double-buffered x tiles (dominant footprint);
    # at least 2 MiB per buffer so DMA time amortizes the ~0.35 us per-grid-step
    # overhead (measured streaming kernels only hit ~85% of HBM roofline >= 512 KiB).
    x_buf_bytes = max(2 << 20, cap // 5)
    rows = (x_buf_bytes // (d * 4)) // 128 * 128
    tile_n = max(128, min(rows, (n // 128) * 128))  # multiple of 128, never > N
    # Scoped-VMEM limit with headroom over the pipeline footprint (x tiles, resident
    # weight, output buffers, compiler scratch). v5e's default is only 16 MiB, so
    # this must be explicit once tiles are sized by bytes.
    vmem_limit = min(int(cap * 0.7), 100 << 20)
    return tile_n, vmem_limit


def _linreg_kernel(x_ref, w_ref, b_ref, o_ref):
    # x_ref: (tile_n, D) streamed VMEM tile; w_ref: (8, D) VMEM-resident weight
    # (same row replicated across 8 sublanes); b_ref: (1, 1) SMEM scalar;
    # o_ref: (1, tile_n) lane-dense output row.
    #
    # MXU A @ B^T: (8, D) . (tile_n, D)^T -> (8, tile_n); every sublane row is
    # identical (= x_tile @ w), so store row 0 plus the bias. This keeps the
    # per-row reduction off the XLU/VPU (the MXU is otherwise idle in this
    # HBM-bound kernel) and the result is already lane-dense along the batch.
    y8 = lax.dot_general(
        w_ref[...],
        x_ref[...],
        dimension_numbers=(((1,), (1,)), ((), ())),
        preferred_element_type=jnp.float32,
    )
    o_ref[...] = y8[0:1, :] + b_ref[0, 0]


def _linear_regression_pallas(x, w8, b_2d):
    """x: (N, D) f32, w8: (8, D) f32 (replicated weight row), b_2d: (1, 1) f32."""
    N, D = x.shape
    tile_n, vmem_limit = _tile_and_vmem_limit(N, D)
    num_tiles = pl.cdiv(N, tile_n)

    out = pl.pallas_call(
        _linreg_kernel,
        out_shape=jax.ShapeDtypeStruct((1, num_tiles * tile_n), jnp.float32),
        grid_spec=pltpu.PrefetchScalarGridSpec(
            num_scalar_prefetch=0,
            grid=(num_tiles,),
            in_specs=[
                # x: (tile_n, D) tiles streamed HBM->VMEM, double-buffered; the last
                # block may overhang N (partial block) -- tail rows are discarded.
                pl.BlockSpec((tile_n, D), lambda i: (i, 0)),
                # weight: same block every step -> stays VMEM-resident.
                pl.BlockSpec((8, D), lambda i: (0, 0)),
                # bias: whole (1, 1) array in SMEM (scalar path, no VMEM tile).
                pl.BlockSpec(memory_space=pltpu.MemorySpace.SMEM),
            ],
            # Lane-dense output: each grid step stores one full (1, tile_n) row.
            out_specs=pl.BlockSpec((1, tile_n), lambda i: (0, i)),
        ),
        compiler_params=pltpu.CompilerParams(
            # Batch tiles are independent; sharded across TensorCores where there is
            # more than one (no-op on single-TC v5e/v6e).
            dimension_semantics=("parallel",),
            vmem_limit_bytes=vmem_limit,
        ),
    )(x, w8, b_2d)

    # (1, num_tiles*tile_n) -> drop the overhang tail, return a (N, 1) column.
    return out[0, :N].reshape(N, 1)


def linear_regression_forward(x, w, b):
    """Forward of Linear(input_dim, 1): y = x @ w + b.

    x: (N, D); w: (D, 1) / (1, D) / (D,); b: scalar / (1,) / (1, 1). Returns (N, 1) f32.
    """
    x = jnp.asarray(x, jnp.float32)
    N, D = x.shape
    w_row = jnp.asarray(w, jnp.float32).reshape(1, D)
    b_2d = jnp.asarray(b, jnp.float32).reshape(1, 1)

    # Small-problem fast path: (tile_n, D) VMEM tiles pad lanes to 128 (4x waste at
    # the module's default D=32) and pallas_call launch overhead dominates below
    # ~1 MiB of x -- plain XLA is faster there.
    if D < 128 or N < 128 or N * D * 4 < (1 << 20):
        return x @ w_row.reshape(D, 1) + b_2d[0, 0]

    w8 = jnp.tile(w_row, (8, 1))  # replicate across sublanes (same VMEM footprint)
    return _linear_regression_pallas(x, w8, b_2d)


if __name__ == "__main__":
    key = jax.random.PRNGKey(0)
    kx1, kx2, kw, kb = jax.random.split(key, 4)

    # Case 1: module-scale shapes (batch=8, input_dim=32) -> small-problem XLA path.
    N1, D1 = 8, 32
    bound1 = 1.0 / (D1 ** 0.5)  # torch.nn.Linear default uniform init bound
    w1 = jax.random.uniform(kw, (D1, 1), jnp.float32, minval=-bound1, maxval=bound1)
    b1 = jax.random.uniform(kb, (1,), jnp.float32, minval=-bound1, maxval=bound1)
    x1 = jax.random.normal(kx1, (N1, D1), jnp.float32)
    out1 = jax.block_until_ready(linear_regression_forward(x1, w1, b1))
    ref1 = x1 @ w1 + b1[0]
    assert out1.shape == (N1, 1)
    assert jnp.allclose(out1, ref1, atol=1e-5, rtol=1e-5)

    # Case 2: shapes that exercise the Pallas kernel path, including a partial
    # (overhanging) last batch tile: N=2000 is not a multiple of tile_n=1920.
    N2, D2 = 2000, 256
    bound2 = 1.0 / (D2 ** 0.5)
    kw2, kb2 = jax.random.split(kw)
    w2 = jax.random.uniform(kw2, (D2, 1), jnp.float32, minval=-bound2, maxval=bound2)
    b2 = jax.random.uniform(kb2, (1, 1), jnp.float32, minval=-bound2, maxval=bound2)
    x2 = jax.random.normal(kx2, (N2, D2), jnp.float32)
    out2 = jax.block_until_ready(linear_regression_forward(x2, w2, b2))
    ref2 = x2 @ w2 + b2[0, 0]
    assert out2.shape == (N2, 1)
    assert jnp.allclose(out2, ref2, atol=1e-3, rtol=1e-3)

    print("KERNEL_OK")
</pallas_src>

<mosaic_0001>
module attributes {stable_mosaic.version = 11 : i64} {
  func.func @_linreg_kernel(%arg0: i32, %arg1: memref<1920x256xf32, #tpu.memory_space<vmem>>, %arg2: memref<8x256xf32, #tpu.memory_space<vmem>>, %arg3: memref<1x1xf32, #tpu.memory_space<smem>>, %arg4: memref<1x1920xf32, #tpu.memory_space<vmem>>) attributes {dimension_semantics = [#tpu.dimension_semantics<parallel>], iteration_bounds = array<i64: 2>, scalar_prefetch = 0 : i64, scratch_operands = 0 : i64, tpu.core_type = #tpu.core_type<tc>, window_params = [{transform_indices = @transform_0, window_bounds = array<i64: 1920, 256>}, {pipeline_mode = #tpu.pipeline_mode<synchronous>, transform_indices = @transform_1, window_bounds = array<i64: 8, 256>}, {transform_indices = @transform_2, window_bounds = array<i64: 1, 1>}, {transform_indices = @transform_3, window_bounds = array<i64: 1, 1920>}]} {
    %c0 = arith.constant 0 : index
    %c0_0 = arith.constant 0 : index
    %0 = vector.load %arg2[%c0, %c0_0] : memref<8x256xf32, #tpu.memory_space<vmem>>, vector<8x256xf32>
    %c0_1 = arith.constant 0 : index
    %c0_2 = arith.constant 0 : index
    %1 = vector.load %arg1[%c0_1, %c0_2] : memref<1920x256xf32, #tpu.memory_space<vmem>>, vector<1920x256xf32>
    %cst = arith.constant dense<0.000000e+00> : vector<8x1920xf32>
    %2 = tpu.matmul %0, %1, %cst {dimension_numbers = #tpu.dot_dimension_numbers<[1], [1], [0], [0], [0, 0, 1, 0], [], []>} : vector<8x256xf32>, vector<1920x256xf32>, vector<8x1920xf32> -> vector<8x1920xf32>
    %3 = vector.extract_strided_slice %2 {offsets = [0, 0], sizes = [1, 1920], strides = [1, 1]} : vector<8x1920xf32> to vector<1x1920xf32>
    %c0_3 = arith.constant 0 : index
    %c0_4 = arith.constant 0 : index
    %4 = memref.load %arg3[%c0_3, %c0_4] : memref<1x1xf32, #tpu.memory_space<smem>>
    %5 = vector.broadcast %4 : f32 to vector<1x1920xf32>
    %6 = arith.addf %3, %5 : vector<1x1920xf32>
    %c0_5 = arith.constant 0 : index
    %c0_6 = arith.constant 0 : index
    %7 = vector.load %arg4[%c0_5, %c0_6] : memref<1x1920xf32, #tpu.memory_space<vmem>>, vector<1x1920xf32>
    tpu.vector_store %arg4[%c0_5, %c0_6], %6 {strides = array<i32>} : memref<1x1920xf32, #tpu.memory_space<vmem>>, vector<1x1920xf32>,
    return
  }
  func.func @transform_0(%arg0: i32) -> (i32, i32) {
    %c0_i32 = arith.constant 0 : i32
    %c0_i32_0 = arith.constant 0 : i32
    return %arg0, %c0_i32 : i32, i32
  }
  func.func @transform_1(%arg0: i32) -> (i32, i32) {
    %c0_i32 = arith.constant 0 : i32
    %c0_i32_0 = arith.constant 0 : i32
    %c0_i32_1 = arith.constant 0 : i32
    return %c0_i32, %c0_i32_0 : i32, i32
  }
  func.func @transform_2(%arg0: i32) -> (i32, i32) {
    %c0_i32 = arith.constant 0 : i32
    %c0_i32_0 = arith.constant 0 : i32
    %c0_i32_1 = arith.constant 0 : i32
    return %c0_i32, %c0_i32_0 : i32, i32
  }
  func.func @transform_3(%arg0: i32) -> (i32, i32) {
    %c0_i32 = arith.constant 0 : i32
    %c0_i32_0 = arith.constant 0 : i32
    return %c0_i32, %arg0 : i32, i32
  }
}

</mosaic_0001>

<bundles_post_ra>
// kernel: tpu_custom_call.1
= control target key start
LH: loop header
LB: loop body
LE: loop exit
PB: predicated region body
PF: predicated region fallthrough
CT: control target
= control target key end

     0   :  { %s2964_s0 = inlined_call_operand.hbm [shape: f32[2000,256], index: 0, kind: input, shape index: {}]   ;;  %s2965_s1 = inlined_call_operand.hbm [shape: f32[8,256], index: 1, kind: input, shape index: {}]   ;;  %s2966_s2 = inlined_call_operand.<no memory space> [shape: f32[1,1], index: 2, kind: input, shape index: {}]   ;;  %s2967_s3 = inlined_call_operand.hbm [shape: f32[1,3840], index: 3, kind: output, shape index: {}]  }
   0x1   :  { %8 = sst [smem:[#allocation2]] %s2966_s2 }
   0x2   :  { %9 = vsyncpa [#allocation4], 0 }
   0x3   :  { %11 = vsyncpa [#allocation4 + $0x1], 0 }
   0x4   :  { %12 = vsyncpa [#allocation7], 0 }
   0x5   :  { %13 = vsyncpa [#allocation5], 0 }
   0x6   :  { %15 = vsyncpa [#allocation5 + $0x1], 0  ;;  %s2216_s14 = smov 0   ;;  %s2218_s15 = smov 0  }
   0x7   :  { %s2220_s16 = smov 0   ;;  %s2222_s17 = smov 0  }
   0x8 LB: > { %s2237_s2 = sadd.s32 4294967295, %s2185_s17   ;;  %s1499_s18 = sadd.s32 4294967294, %s2185_s17   ;;  %s2185_s17 = sphi %s2222_s17, %s2988_s17   ;;  %s2181_s16 = sphi %s2220_s16, %s2987_s16   ;;  %s2177_s15 = sphi %s2218_s15, %s2986_s15   ;;  %s2173_s14 = sphi %s2216_s14, %s2985_s14  }
   0x9   : > { %s2241_s19 = sadd.s32 1, %s2185_s17   ;;  %s28_s20 = sadd.s32 1, %s2181_s16 }
   0xa   : > { %s25_s21 = ssub.s32 %s2185_s17, %s2241_s19  ;;  %p35_p0 = scmp.ne.s32.totalorder %s2181_s16, %s2177_s15 }
   0xb   : > { %p26_p1 = scmp.eq.s32.totalorder %s25_s21, 0  ;;  %p36_p2 = scmp.eq.s32.totalorder %s2185_s17, 0 }
   0xc   : > { %p41_p3 = scmp.ne.s32.totalorder %s2177_s15, %s2173_s14  ;;  %p2968_p4 = scmp.eq.s32.totalorder %s2237_s2, 0 }
   0xd   : > { %s2253_s22 = scalar_select %p26_p1, %s2181_s16, %s28_s20  }
   0xe   : > { %p2255_p5 = por %p36_p2, %p35_p0  ;;  %p2261_p6 = por %p2968_p4, %p41_p3 }
   0xf   : > { %p107_p7 = scmp.eq.s32.totalorder %s2237_s2, 1  ;;  %p113_p8 = scmp.eq.s32.totalorder %s1499_s18, 1 }
  0x10   : > { %s2972_s23 = scalar_select %p2255_p5, 1, 0 }
  0x11   : > { %s2973_s24 = scalar_select %p2261_p6, 1, 0 }
  0x12   : > { %p1500_p9 = scmp.ge.s32.totalorder %s2185_s17, 1  ;;  %p120_p10 = scmp.lt.s32.totalorder %s2185_s17, 3 }
  0x13   : > { %p2268_p11 = por %p107_p7, %p35_p0  ;;  %p2272_p12 = por %p113_p8, %p41_p3 }
  0x14   : > { %p2276_p13 = pnand %p1500_p9, %p120_p10  ;;  %s2187_s28 = smov [#allocation6]  }
  0x15   : > { %s2974_s25 = scalar_select %p2268_p11, 1, 0 }
  0x16   : > { %s2975_s26 = scalar_select %p2272_p12, 1, 0 }
  0x17   : > { %s2976_s27 = scalar_select %p2276_p13, 1, 0 }
  0x18   : > { %p2010_p1 = pneg %p2276_p13  ;;  %s133_s29 = sshll.u32 %s2187_s28, 4  ;;  %s134_s29 = int_to_ptr.vmem [resolvable:$true] %s133_s29 }
  0x19   : > { %s2059_s6 = scalar_lea.hbm %s2965_s1, 256 }
  0x1a   : > { %p2284_p2 = pnand %p2010_p1, %p2968_p4  ;;  %p2060_p0 = scmp.ne.s32.totalorder %s2965_s1, %s2059_s6 }
  0x1b   : > { %p2066_p9 = scmp.lt.u32.totalorder %s2059_s6, %s2965_s1 }
  0x1c   : > { %p2061_p3 = pneg %p2284_p2 }
  0x1e   : > { %p2062_p7 = pnand %p2061_p3, %p2060_p0 }
  0x20   : > { %p2063_p8 = pneg %p2062_p7 }
  0x22   : > { %p2068_p10 = pnand %p2066_p9, %p2063_p8 }
  0x24   : > { %2071 = shalt.err (!%p2068_p10)
}
  0x25   : > { %s2072_s11 = scalar_lea.vmem %s134_s29, 256  ;;  %p2080_p11 = scmp.lt.s32.totalorder %s134_s29, %s134_s29 }
  0x26   : > { %p2073_p1 = scmp.ne.s32.totalorder %s134_s29, %s2072_s11  ;;  %p2081_p6 = scmp.lt.s32.totalorder %s2072_s11, %s2072_s11 }
  0x28   : > { %p2075_p4 = pnand %p2073_p1, %p2061_p3  ;;  %p2082_p13 = por %p2081_p6, %p2080_p11 }
  0x2a   : > { %p2076_p12 = pneg %p2075_p4 }
  0x2c   : > { %p2083_p5 = pnand %p2082_p13, %p2076_p12 }
  0x2e   : > { %2086 = shalt.err (!%p2083_p5)
}
  0x2f   : > { %2013 = dma.hbm_to_vmem [thread:$0]  (!%p2284_p2), %s2965_s1, 256, %s134_s29, [#allocation7]  }
  0x30   : > { %p1502_p0 = scmp.ge.s32.totalorder %s2185_s17, 2 }
  0x31   : > { %p2978_p7 = scmp.ne.s32.totalorder (!%p1502_p0), %s2972_s23, 0 }
  0x32   : > { %143 = sbr.rel (%p1502_p0) target bundleno = 92 (0x5c), region = 24 }
  0x39   : > { %146 = sbr.rel (!%p2978_p7) target bundleno = 92 (0x5c), region = 28  ;;  %s147_s18 = sand.u32 (%p2978_p7), 1, %s2181_s16  }
  0x3a   : > { %s152_s20 = smul.u32 (%p2978_p7), 240, %s2185_s17  ;;  %s2314_s4 = scalar_lea.sflag (%p2978_p7), [#allocation4], %s147_s18 }
  0x3b   : > { %s2000_s21 = smul.u32 (%p2978_p7), 3840, %s147_s18 }
  0x3c   : > { %s153_s28 = ssub.s32 (%p2978_p7), 250, %s152_s20 }
  0x3d   : > { %p154_p4 = scmp.lt.s32.totalorder (%p2978_p7), %s153_s28, 240  ;;  %s151_s5 = scalar_lea.vmem (%p2978_p7), [#allocation3], %s2000_s21 }
  0x40   : > { %s2990_s28 = smov (!%p154_p4, %s153_s28), 240 }
  0x41   : > { %s2311_s30 = sshll.u32 %s2990_s28, 8 }
  0x42   : > { %s159_s29 = ssub.s32 61440, %s2311_s30 }
  0x43   : > { %160 = vsyncadd %s2314_s4, %s159_s29  ;;  %p1505_p5 = scmp.ne.s32.totalorder %s2311_s30, 0  ;;  %s1519_s23 = smul.u32 61440, %s2185_s17 }
  0x44   : > { %s166_s6 = sshll.u32 %s151_s5, 4  ;;  %s2091_s13 = scalar_lea.hbm %s2964_s0, 64000  ;;  %s2324_s6 = int_to_ptr.vmem [resolvable:$true] %s166_s6 }
  0x45   : > { %s2322_s9 = scalar_lea.hbm %s2964_s0, %s1519_s23 }
  0x46   : > { %s2087_s10 = scalar_lea.hbm %s2322_s9, %s2311_s30  ;;  %p2092_p13 = scmp.lt.u32.totalorder %s2322_s9, %s2964_s0 }
  0x47   : > { %p2088_p6 = scmp.ne.s32.totalorder %s2322_s9, %s2087_s10  ;;  %p2093_p2 = scmp.lt.u32.totalorder %s2091_s13, %s2087_s10 }
  0x48   : > { %p2095_p8 = scmp.lt.u32.totalorder %s2087_s10, %s2322_s9 }
  0x49   : > { %p2089_p11 = pnand %p2088_p6, %p1505_p5  ;;  %p2094_p3 = por %p2093_p2, %p2092_p13 }
  0x4b   : > { %p2090_p12 = pneg %p2089_p11  ;;  %p2096_p9 = por %p2095_p8, %p2094_p3 }
  0x4d   : > { %p2097_p10 = pnand %p2096_p9, %p2090_p12 }
  0x4f   : > { %2100 = shalt.err (!%p2097_p10)
}
  0x50   : > { %s2101_s21 = scalar_lea.vmem %s2324_s6, %s2311_s30  ;;  %s2188_s28 = smov [#allocation3]  }
  0x51   : > { %p2102_p1 = scmp.ne.s32.totalorder %s2324_s6, %s2101_s21  ;;  %s2105_s29 = sshll.u32 %s2188_s28, 4  ;;  %s2106_s29 = int_to_ptr.vmem [resolvable:$false] %s2105_s29 }
  0x52   : > { %s2107_s5 = scalar_lea.vmem %s2106_s29, 122880  ;;  %p2108_p6 = scmp.lt.s32.totalorder %s2324_s6, %s2106_s29 }
  0x53   : > { %p2103_p7 = pnand %p2102_p1, %p1505_p5  ;;  %p2109_p11 = scmp.lt.s32.totalorder %s2107_s5, %s2101_s21 }
  0x55   : > { %p2104_p4 = pneg %p2103_p7  ;;  %p2110_p13 = por %p2109_p11, %p2108_p6 }
  0x57   : > { %p2111_p2 = pnand %p2110_p13, %p2104_p4 }
  0x59   : > { %2114 = shalt.err (!%p2111_p2)
}
  0x5a   : > { %s2189_s23 = smov 256   ;;  %s2190_s7 = smov 16  }
  0x5b   : > { %172 = dma.hbm_to_vmem [thread:$0]  (%p1505_p5), %s2322_s9, %s2311_s30, %s2324_s6, %s2314_s4, %s2189_s23, %s2189_s23, %s2190_s7  }
  0x5c PF: > { %p2979_p12 = scmp.ne.s32.totalorder %s2976_s27, 0 }
  0x5d   : > { %s2354_s8 = sand.u32 (!%p2979_p12), 1, %s2177_s15   ;;  %p2980_p3 = scmp.ne.s32.totalorder (!%p2979_p12), %s2973_s24, 0 }
  0x5e   : > { %178 = sbr.rel (%p2979_p12) target bundleno = 860 (0x35c), region = 32  ;;  %s181_s11 = scalar_lea.sflag (!%p2979_p12), [#allocation4], %s2354_s8 }
  0x5f   : > { %s2001_s10 = smul.u32 (!%p2979_p12), 3840, %s2354_s8 }
  0x61   : > { %s2358_s12 = scalar_lea.vmem (!%p2979_p12), [#allocation3], %s2001_s10 }
  0x65   : > { %2160 = dma.done.wait (%p2980_p3), %s181_s11, 61440  }
  0x66   : > { %2162 = vsyncadd (%p2980_p3), %s181_s11, 4294905856  ;;  %p2981_p5 = scmp.eq.s32.totalorder %s2237_s2, 0 }
  0x68   : > { %2164 = dma.done.wait (%p2981_p5), [#allocation7], 256   ;;  %p2982_p8 = pmov %p2981_p5 }
  0x69   : > { %v221_v0 = vld [vmem:[%s2358_s12 + $0x8] sm:$0xff]  ;;  %v223_v1 = vld [vmem:[%s2358_s12 + $0x18] sm:$0xff]  ;;  %v220_v5 = vld [vmem:[%s2358_s12] sm:$0xff]  ;;  %s1267_s24 = sld [smem:[#allocation2]]  ;;  %s2002_s27 = smul.u32 15, %s2354_s8 }
  0x6a   : > { %2166 = vsyncadd (%p2982_p8), [#allocation7], 4294967040  ;;  %v285_v2 = vld [vmem:[%s2358_s12 + $0x208] sm:$0xff]  ;;  %v1520_v3 = vpack.c.bf16 %v223_v1, %v221_v0  ;;  %v287_v4 = vld [vmem:[%s2358_s12 + $0x218] sm:$0xff]  ;;  %s1518_s4 = smul.u32 240, %s2237_s2  ;;  %s1405_s2 = scalar_lea.sflag [#allocation5], %s2354_s8 }
  0x6b   : > { %v222_v6 = vld [vmem:[%s2358_s12 + $0x10] sm:$0xff]  ;;  %v1584_v7 = vpack.c.bf16 %v287_v4, %v285_v2  ;;  %v284_v9 = vld [vmem:[%s2358_s12 + $0x200] sm:$0xff]  ;;  %v225_v11 = vld [vmem:[%s2358_s12 + $0x28] sm:$0xff]  ;;  %s2888_s30 = scalar_lea.vmem [#allocation8], %s2002_s27  ;;  %p2983_p10 = scmp.ne.s32.totalorder %s2974_s25, 0 }
  0x6c   : > { %v1522_v8 = vpack.c.bf16 %v222_v6, %v220_v5  ;;  %v286_v10 = vld [vmem:[%s2358_s12 + $0x210] sm:$0xff]  ;;  %1521 = vmatprep.subr.bf16.mxu0 %v1520_v3  ;;  %v227_v13 = vld [vmem:[%s2358_s12 + $0x38] sm:$0xff]  ;;  %v289_v14 = vld [vmem:[%s2358_s12 + $0x228] sm:$0xff]  ;;  %s1419_s6 = sshll.u32 %s2888_s30, 4  ;;  %s2919_s18 = scalar_lea.hbm %s2967_s3, %s1518_s4  ;;  %s2921_s6 = int_to_ptr.vmem [resolvable:$true] %s1419_s6 }
  0x6d   : > { %v1586_v12 = vpack.c.bf16 %v286_v10, %v284_v9  ;;  %v291_v15 = vld [vmem:[%s2358_s12 + $0x238] sm:$0xff]  ;;  %1585 = vmatprep.subr.bf16.mxu1 %v1584_v7  ;;  %v1524_v16 = vpack.c.bf16 %v227_v13, %v225_v11  ;;  %v224_v18 = vld [vmem:[%s2358_s12 + $0x20] sm:$0xff]  ;;  %v226_v19 = vld [vmem:[%s2358_s12 + $0x30] sm:$0xff]  ;;  %s2115_s20 = scalar_lea.vmem %s2921_s6, 240  ;;  %s2192_s21 = smov [#allocation8]  }
  0x6e   : > { %1523 = vmatpush1.bf16.xpose.msra.mxu0 %v1522_v8  ;;  %v1588_v17 = vpack.c.bf16 %v291_v15, %v289_v14  ;;  %v288_v20 = vld [vmem:[%s2358_s12 + $0x220] sm:$0xff]  ;;  %v290_v21 = vld [vmem:[%s2358_s12 + $0x230] sm:$0xff]  ;;  %v229_v22 = vld [vmem:[%s2358_s12 + $0x48] sm:$0xff]  ;;  %v1526_v26 = vpack.c.bf16 %v226_v19, %v224_v18  ;;  %p2116_p9 = scmp.ne.s32.totalorder %s2921_s6, %s2115_s20  ;;  %s2119_s28 = sshll.u32 %s2192_s21, 4  ;;  %s2120_s28 = int_to_ptr.vmem [resolvable:$false] %s2119_s28 }
  0x6f   : > { %1587 = vmatpush1.bf16.xpose.msra.mxu1 %v1586_v12  ;;  %1525 = vmatprep.subr.bf16.mxu0 %v1524_v16  ;;  %v231_v23 = vld [vmem:[%s2358_s12 + $0x58] sm:$0xff]  ;;  %v293_v24 = vld [vmem:[%s2358_s12 + $0x248] sm:$0xff]  ;;  %v1590_v27 = vpack.c.bf16 %v290_v21, %v288_v20  ;;  %v228_v30 = vld [vmem:[%s2358_s12 + $0x40] sm:$0xff]  ;;  %s2121_s29 = scalar_lea.vmem %s2120_s28, 480  ;;  %p2122_p4 = scmp.lt.s32.totalorder %s2921_s6, %s2120_s28 }
  0x70   : > { %1589 = vmatprep.subr.bf16.mxu1 %v1588_v17  ;;  %v295_v25 = vld [vmem:[%s2358_s12 + $0x258] sm:$0xff]  ;;  %v1528_v28 = vpack.c.bf16 %v231_v23, %v229_v22  ;;  %v230_v31 = vld [vmem:[%s2358_s12 + $0x50] sm:$0xff]  ;;  %v292_v32 = vld [vmem:[%s2358_s12 + $0x240] sm:$0xff]  ;;  %p2117_p1 = pnand %p2116_p9, %p2983_p10  ;;  %p2123_p6 = scmp.lt.s32.totalorder %s2121_s29, %s2115_s20 }
  0x71   : > { %v1592_v29 = vpack.c.bf16 %v295_v25, %v293_v24  ;;  %v294_v33 = vld [vmem:[%s2358_s12 + $0x250] sm:$0xff]  ;;  %v233_v34 = vld [vmem:[%s2358_s12 + $0x68] sm:$0xff]  ;;  %v235_v35 = vld [vmem:[%s2358_s12 + $0x78] sm:$0xff]  ;;  %v1530_v38 = vpack.c.bf16 %v230_v31, %v228_v30 }
  0x72   : > { %v297_v36 = vld [vmem:[%s2358_s12 + $0x268] sm:$0xff]  ;;  %v299_v37 = vld [vmem:[%s2358_s12 + $0x278] sm:$0xff]  ;;  %v1594_v39 = vpack.c.bf16 %v294_v33, %v292_v32  ;;  %v1532_v40 = vpack.c.bf16 %v235_v35, %v233_v34  ;;  %v232_v42 = vld [vmem:[%s2358_s12 + $0x60] sm:$0xff]  ;;  %p2118_p7 = pneg %p2117_p1  ;;  %p2124_p11 = por %p2123_p6, %p2122_p4 }
  0x73   : > { %v1596_v41 = vpack.c.bf16 %v299_v37, %v297_v36  ;;  %v234_v43 = vld [vmem:[%s2358_s12 + $0x70] sm:$0xff]  ;;  %v296_v44 = vld [vmem:[%s2358_s12 + $0x260] sm:$0xff]  ;;  %v237_v46 = vld [vmem:[%s2358_s12 + $0x88] sm:$0xff] }
  0x74   : > { %v298_v45 = vld [vmem:[%s2358_s12 + $0x270] sm:$0xff]  ;;  %v239_v47 = vld [vmem:[%s2358_s12 + $0x98] sm:$0xff]  ;;  %v301_v48 = vld [vmem:[%s2358_s12 + $0x288] sm:$0xff]  ;;  %v1534_v50 = vpack.c.bf16 %v234_v43, %v232_v42  ;;  %p2125_p13 = pnand %p2124_p11, %p2118_p7 }
  0x75   : > { %v303_v49 = vld [vmem:[%s2358_s12 + $0x298] sm:$0xff]  ;;  %v1598_v51 = vpack.c.bf16 %v298_v45, %v296_v44  ;;  %v1536_v52 = vpack.c.bf16 %v239_v47, %v237_v46  ;;  %v236_v54 = vld [vmem:[%s2358_s12 + $0x80] sm:$0xff]  ;;  %v238_v55 = vld [vmem:[%s2358_s12 + $0x90] sm:$0xff] }
  0x76   : > { %1527 = vmatpush1.bf16.xpose.msra.mxu0 %v1526_v26  ;;  %v1600_v53 = vpack.c.bf16 %v303_v49, %v301_v48  ;;  %v300_v56 = vld [vmem:[%s2358_s12 + $0x280] sm:$0xff]  ;;  %v302_v57 = vld [vmem:[%s2358_s12 + $0x290] sm:$0xff]  ;;  %v241_v58 = vld [vmem:[%s2358_s12 + $0xa8] sm:$0xff]  ;;  %v1538_v62 = vpack.c.bf16 %v238_v55, %v236_v54 }
  0x77   : > { %1591 = vmatpush1.bf16.xpose.msra.mxu1 %v1590_v27  ;;  %1529 = vmatprep.subr.bf16.mxu0 %v1528_v28  ;;  %v243_v59 = vld [vmem:[%s2358_s12 + $0xb8] sm:$0xff]  ;;  %v305_v60 = vld [vmem:[%s2358_s12 + $0x2a8] sm:$0xff]  ;;  %v1602_v63 = vpack.c.bf16 %v302_v57, %v300_v56  ;;  %v240_v2 = vld [vmem:[%s2358_s12 + $0xa0] sm:$0xff] }
  0x78   : > { %1593 = vmatprep.subr.bf16.mxu1 %v1592_v29  ;;  %v307_v61 = vld [vmem:[%s2358_s12 + $0x2b8] sm:$0xff]  ;;  %v1540_v0 = vpack.c.bf16 %v243_v59, %v241_v58  ;;  %v242_v3 = vld [vmem:[%s2358_s12 + $0xb0] sm:$0xff]  ;;  %v304_v4 = vld [vmem:[%s2358_s12 + $0x2a0] sm:$0xff] }
  0x79   : > { %v1604_v1 = vpack.c.bf16 %v307_v61, %v305_v60  ;;  %v306_v5 = vld [vmem:[%s2358_s12 + $0x2b0] sm:$0xff]  ;;  %v245_v6 = vld [vmem:[%s2358_s12 + $0xc8] sm:$0xff]  ;;  %v247_v7 = vld [vmem:[%s2358_s12 + $0xd8] sm:$0xff]  ;;  %v1542_v10 = vpack.c.bf16 %v242_v3, %v240_v2 }
  0x7a   : > { %v309_v8 = vld [vmem:[%s2358_s12 + $0x2c8] sm:$0xff]  ;;  %v311_v9 = vld [vmem:[%s2358_s12 + $0x2d8] sm:$0xff]  ;;  %v1606_v11 = vpack.c.bf16 %v306_v5, %v304_v4  ;;  %v1544_v12 = vpack.c.bf16 %v247_v7, %v245_v6  ;;  %v244_v15 = vld [vmem:[%s2358_s12 + $0xc0] sm:$0xff] }
  0x7b   : > { %v1608_v13 = vpack.c.bf16 %v311_v9, %v309_v8  ;;  %v2420_v14 = vld [vmem:[#allocation6 + $0x8] sm:$0xff]  ;;  %v246_v16 = vld [vmem:[%s2358_s12 + $0xd0] sm:$0xff]  ;;  %v308_v17 = vld [vmem:[%s2358_s12 + $0x2c0] sm:$0xff] }
  0x7c   : > { %764 = vmatprep.mubr.f32.mxu0 %v2420_v14  ;;  %835 = vmatprep.mubr.f32.mxu1 %v2420_v14  ;;  %v310_v18 = vld [vmem:[%s2358_s12 + $0x2d0] sm:$0xff]  ;;  %v249_v19 = vld [vmem:[%s2358_s12 + $0xe8] sm:$0xff]  ;;  %v251_v20 = vld [vmem:[%s2358_s12 + $0xf8] sm:$0xff]  ;;  %v1546_v23 = vpack.c.bf16 %v246_v16, %v244_v15 }
  0x7d   : > { %v313_v21 = vld [vmem:[%s2358_s12 + $0x2e8] sm:$0xff]  ;;  %v315_v22 = vld [vmem:[%s2358_s12 + $0x2f8] sm:$0xff]  ;;  %v1610_v24 = vpack.c.bf16 %v310_v18, %v308_v17  ;;  %v1548_v25 = vpack.c.bf16 %v251_v20, %v249_v19  ;;  %v248_v27 = vld [vmem:[%s2358_s12 + $0xe0] sm:$0xff] }
  0x7e   : > { %1531 = vmatpush1.bf16.xpose.msra.mxu0 %v1530_v38  ;;  %v1612_v26 = vpack.c.bf16 %v315_v22, %v313_v21  ;;  %v250_v28 = vld [vmem:[%s2358_s12 + $0xf0] sm:$0xff]  ;;  %v312_v29 = vld [vmem:[%s2358_s12 + $0x2e0] sm:$0xff]  ;;  %v253_v31 = vld [vmem:[%s2358_s12 + $0x108] sm:$0xff] }
  0x7f   : > { %1595 = vmatpush1.bf16.xpose.msra.mxu1 %v1594_v39  ;;  %1533 = vmatprep.subr.bf16.mxu0 %v1532_v40  ;;  %v314_v30 = vld [vmem:[%s2358_s12 + $0x2f0] sm:$0xff]  ;;  %v255_v32 = vld [vmem:[%s2358_s12 + $0x118] sm:$0xff]  ;;  %v317_v33 = vld [vmem:[%s2358_s12 + $0x308] sm:$0xff]  ;;  %v1550_v35 = vpack.c.bf16 %v250_v28, %v248_v27 }
  0x80   : > { %1597 = vmatprep.subr.bf16.mxu1 %v1596_v41  ;;  %v319_v34 = vld [vmem:[%s2358_s12 + $0x318] sm:$0xff]  ;;  %v1614_v36 = vpack.c.bf16 %v314_v30, %v312_v29  ;;  %v1552_v37 = vpack.c.bf16 %v255_v32, %v253_v31  ;;  %v252_v39 = vld [vmem:[%s2358_s12 + $0x100] sm:$0xff]  ;;  %v254_v40 = vld [vmem:[%s2358_s12 + $0x110] sm:$0xff] }
  0x81   : > { %v1616_v38 = vpack.c.bf16 %v319_v34, %v317_v33  ;;  %v316_v41 = vld [vmem:[%s2358_s12 + $0x300] sm:$0xff]  ;;  %v318_v42 = vld [vmem:[%s2358_s12 + $0x310] sm:$0xff]  ;;  %v257_v43 = vld [vmem:[%s2358_s12 + $0x128] sm:$0xff]  ;;  %v1554_v47 = vpack.c.bf16 %v254_v40, %v252_v39 }
  0x82   : > { %v259_v44 = vld [vmem:[%s2358_s12 + $0x138] sm:$0xff]  ;;  %v321_v45 = vld [vmem:[%s2358_s12 + $0x328] sm:$0xff]  ;;  %v1618_v48 = vpack.c.bf16 %v318_v42, %v316_v41  ;;  %v322_v54 = vld [vmem:[%s2358_s12 + $0x330] sm:$0xff] }
  0x83   : > { %v323_v46 = vld [vmem:[%s2358_s12 + $0x338] sm:$0xff]  ;;  %v1556_v49 = vpack.c.bf16 %v259_v44, %v257_v43  ;;  %v261_v55 = vld [vmem:[%s2358_s12 + $0x148] sm:$0xff]  ;;  %v326_v2 = vld [vmem:[%s2358_s12 + $0x350] sm:$0xff] }
  0x84   : > { %v263_v56 = vld [vmem:[%s2358_s12 + $0x158] sm:$0xff]  ;;  %v325_v57 = vld [vmem:[%s2358_s12 + $0x348] sm:$0xff]  ;;  %v330_v15 = vld [vmem:[%s2358_s12 + $0x370] sm:$0xff] }
  0x85   : > { %v327_v58 = vld [vmem:[%s2358_s12 + $0x358] sm:$0xff]  ;;  %v1560_v61 = vpack.c.bf16 %v263_v56, %v261_v55  ;;  %v265_v3 = vld [vmem:[%s2358_s12 + $0x168] sm:$0xff]  ;;  %v334_v27 = vld [vmem:[%s2358_s12 + $0x390] sm:$0xff] }
  0x86   : > { %1535 = vmatpush1.bf16.xpose.msra.mxu0 %v1534_v50  ;;  %v1620_v50 = vpack.c.bf16 %v323_v46, %v321_v45  ;;  %v267_v4 = vld [vmem:[%s2358_s12 + $0x178] sm:$0xff]  ;;  %v329_v5 = vld [vmem:[%s2358_s12 + $0x368] sm:$0xff]  ;;  %v338_v39 = vld [vmem:[%s2358_s12 + $0x3b0] sm:$0xff] }
  0x87   : > { %1599 = vmatpush1.bf16.xpose.msra.mxu1 %v1598_v51  ;;  %1537 = vmatprep.subr.bf16.mxu0 %v1536_v52  ;;  %v256_v51 = vld [vmem:[%s2358_s12 + $0x120] sm:$0xff]  ;;  %v258_v52 = vld [vmem:[%s2358_s12 + $0x130] sm:$0xff]  ;;  %v331_v6 = vld [vmem:[%s2358_s12 + $0x378] sm:$0xff]  ;;  %v1564_v9 = vpack.c.bf16 %v267_v4, %v265_v3 }
  0x88   : > { %1601 = vmatprep.subr.bf16.mxu1 %v1600_v53  ;;  %v320_v53 = vld [vmem:[%s2358_s12 + $0x320] sm:$0xff]  ;;  %v1558_v59 = vpack.c.bf16 %v258_v52, %v256_v51  ;;  %v269_v16 = vld [vmem:[%s2358_s12 + $0x188] sm:$0xff]  ;;  %v271_v17 = vld [vmem:[%s2358_s12 + $0x198] sm:$0xff] }
  0x89   : > { %v1622_v60 = vpack.c.bf16 %v322_v54, %v320_v53  ;;  %v333_v18 = vld [vmem:[%s2358_s12 + $0x388] sm:$0xff]  ;;  %v335_v19 = vld [vmem:[%s2358_s12 + $0x398] sm:$0xff]  ;;  %v1568_v22 = vpack.c.bf16 %v271_v17, %v269_v16  ;;  %v342_v51 = vld [vmem:[%s2358_s12 + $0x3d0] sm:$0xff] }
  0x8a   : > { %v273_v28 = vld [vmem:[%s2358_s12 + $0x1a8] sm:$0xff]  ;;  %v275_v29 = vld [vmem:[%s2358_s12 + $0x1b8] sm:$0xff]  ;;  %v2512_v17 = vld [vmem:[#allocation6] sm:$0xff] }
  0x8b   : > { %v337_v30 = vld [vmem:[%s2358_s12 + $0x3a8] sm:$0xff]  ;;  %v339_v31 = vld [vmem:[%s2358_s12 + $0x3b8] sm:$0xff]  ;;  %v1572_v34 = vpack.c.bf16 %v275_v29, %v273_v28 }
  0x8c   : > { %v277_v40 = vld [vmem:[%s2358_s12 + $0x1c8] sm:$0xff]  ;;  %v279_v41 = vld [vmem:[%s2358_s12 + $0x1d8] sm:$0xff] }
  0x8d   : > { %v341_v42 = vld [vmem:[%s2358_s12 + $0x3c8] sm:$0xff]  ;;  %v343_v43 = vld [vmem:[%s2358_s12 + $0x3d8] sm:$0xff]  ;;  %v1576_v46 = vpack.c.bf16 %v279_v41, %v277_v40 }
  0x8e   : > { %1539 = vmatpush1.bf16.xpose.msra.mxu0 %v1538_v62  ;;  %v1624_v62 = vpack.c.bf16 %v327_v58, %v325_v57  ;;  %v281_v52 = vld [vmem:[%s2358_s12 + $0x1e8] sm:$0xff]  ;;  %v283_v53 = vld [vmem:[%s2358_s12 + $0x1f8] sm:$0xff] }
  0x8f   : > { %1603 = vmatpush1.bf16.xpose.msra.mxu1 %v1602_v63  ;;  %1541 = vmatprep.subr.bf16.mxu0 %v1540_v0  ;;  %v260_v63 = vld [vmem:[%s2358_s12 + $0x140] sm:$0xff]  ;;  %v262_v0 = vld [vmem:[%s2358_s12 + $0x150] sm:$0xff]  ;;  %v345_v54 = vld [vmem:[%s2358_s12 + $0x3e8] sm:$0xff]  ;;  %v1580_v58 = vpack.c.bf16 %v283_v53, %v281_v52 }
  0x90   : > { %1605 = vmatprep.subr.bf16.mxu1 %v1604_v1  ;;  %v324_v1 = vld [vmem:[%s2358_s12 + $0x340] sm:$0xff]  ;;  %v1562_v7 = vpack.c.bf16 %v262_v0, %v260_v63  ;;  %v347_v55 = vld [vmem:[%s2358_s12 + $0x3f8] sm:$0xff]  ;;  %v346_v63 = vld [vmem:[%s2358_s12 + $0x3f0] sm:$0xff] }
  0x91   : > { %v1626_v8 = vpack.c.bf16 %v326_v2, %v324_v1  ;;  %v349_v0 = vld [vmem:[%s2358_s12 + $0x408] sm:$0xff]  ;;  %v351_v1 = vld [vmem:[%s2358_s12 + $0x418] sm:$0xff] }
  0x92   : > { %v413_v2 = vld [vmem:[%s2358_s12 + $0x608] sm:$0xff]  ;;  %v415_v3 = vld [vmem:[%s2358_s12 + $0x618] sm:$0xff] }
  0x93   : > { %v419_v16 = vld [vmem:[%s2358_s12 + $0x638] sm:$0xff]  ;;  %v421_v28 = vld [vmem:[%s2358_s12 + $0x648] sm:$0xff] }
  0x94   : > { %v423_v29 = vld [vmem:[%s2358_s12 + $0x658] sm:$0xff]  ;;  %v425_v40 = vld [vmem:[%s2358_s12 + $0x668] sm:$0xff] }
  0x95   : > { %v427_v41 = vld [vmem:[%s2358_s12 + $0x678] sm:$0xff]  ;;  %v429_v52 = vld [vmem:[%s2358_s12 + $0x688] sm:$0xff] }
  0x96   : > { %1543 = vmatpush1.bf16.xpose.msra.mxu0 %v1542_v10  ;;  %v1628_v10 = vpack.c.bf16 %v331_v6, %v329_v5  ;;  %v1648_v6 = vpack.c.bf16 %v351_v1, %v349_v0  ;;  %v431_v53 = vld [vmem:[%s2358_s12 + $0x698] sm:$0xff]  ;;  %v433_v0 = vld [vmem:[%s2358_s12 + $0x6a8] sm:$0xff] }
  0x97   : > { %1607 = vmatpush1.bf16.xpose.msra.mxu1 %v1606_v11  ;;  %1545 = vmatprep.subr.bf16.mxu0 %v1544_v12  ;;  %v264_v11 = vld [vmem:[%s2358_s12 + $0x160] sm:$0xff]  ;;  %v266_v12 = vld [vmem:[%s2358_s12 + $0x170] sm:$0xff]  ;;  %v435_v1 = vld [vmem:[%s2358_s12 + $0x6b8] sm:$0xff] }
  0x98   : > { %1609 = vmatprep.subr.bf16.mxu1 %v1608_v13  ;;  %v328_v13 = vld [vmem:[%s2358_s12 + $0x360] sm:$0xff]  ;;  %v1566_v20 = vpack.c.bf16 %v266_v12, %v264_v11  ;;  %v414_v11 = vld [vmem:[%s2358_s12 + $0x610] sm:$0xff]  ;;  %v353_v12 = vld [vmem:[%s2358_s12 + $0x428] sm:$0xff] }
  0x99   : > { %v1630_v21 = vpack.c.bf16 %v330_v15, %v328_v13  ;;  %v355_v13 = vld [vmem:[%s2358_s12 + $0x438] sm:$0xff]  ;;  %v417_v15 = vld [vmem:[%s2358_s12 + $0x628] sm:$0xff] }
  0x9e   : > { %1547 = vmatpush1.bf16.xpose.msra.mxu0 %v1546_v23  ;;  %v1632_v23 = vpack.c.bf16 %v335_v19, %v333_v18 }
  0x9f   : > { %1611 = vmatpush1.bf16.xpose.msra.mxu1 %v1610_v24  ;;  %1549 = vmatprep.subr.bf16.mxu0 %v1548_v25  ;;  %v268_v24 = vld [vmem:[%s2358_s12 + $0x180] sm:$0xff]  ;;  %v270_v25 = vld [vmem:[%s2358_s12 + $0x190] sm:$0xff] }
  0xa0   : > { %1613 = vmatprep.subr.bf16.mxu1 %v1612_v26  ;;  %v332_v26 = vld [vmem:[%s2358_s12 + $0x380] sm:$0xff]  ;;  %v1570_v32 = vpack.c.bf16 %v270_v25, %v268_v24  ;;  %v418_v25 = vld [vmem:[%s2358_s12 + $0x630] sm:$0xff] }
  0xa1   : > { %v1634_v33 = vpack.c.bf16 %v334_v27, %v332_v26  ;;  %v416_v24 = vld [vmem:[%s2358_s12 + $0x620] sm:$0xff]  ;;  %v357_v26 = vld [vmem:[%s2358_s12 + $0x448] sm:$0xff]  ;;  %v359_v27 = vld [vmem:[%s2358_s12 + $0x458] sm:$0xff] }
  0xa6   : > { %1551 = vmatpush1.bf16.xpose.msra.mxu0 %v1550_v35  ;;  %v1636_v35 = vpack.c.bf16 %v339_v31, %v337_v30  ;;  %v1718_v31 = vpack.c.bf16 %v418_v25, %v416_v24  ;;  %v377_v24 = vld [vmem:[%s2358_s12 + $0x4e8] sm:$0xff]  ;;  %v379_v25 = vld [vmem:[%s2358_s12 + $0x4f8] sm:$0xff] }
  0xa7   : > { %1615 = vmatpush1.bf16.xpose.msra.mxu1 %v1614_v36  ;;  %1553 = vmatprep.subr.bf16.mxu0 %v1552_v37  ;;  %v272_v36 = vld [vmem:[%s2358_s12 + $0x1a0] sm:$0xff]  ;;  %v274_v37 = vld [vmem:[%s2358_s12 + $0x1b0] sm:$0xff] }
  0xa8   : > { %1617 = vmatprep.subr.bf16.mxu1 %v1616_v38  ;;  %v336_v38 = vld [vmem:[%s2358_s12 + $0x3a0] sm:$0xff]  ;;  %v1574_v44 = vpack.c.bf16 %v274_v37, %v272_v36  ;;  %v422_v37 = vld [vmem:[%s2358_s12 + $0x650] sm:$0xff] }
  0xa9   : > { %v1638_v45 = vpack.c.bf16 %v338_v39, %v336_v38  ;;  %v420_v36 = vld [vmem:[%s2358_s12 + $0x640] sm:$0xff]  ;;  %v361_v38 = vld [vmem:[%s2358_s12 + $0x468] sm:$0xff]  ;;  %v363_v39 = vld [vmem:[%s2358_s12 + $0x478] sm:$0xff] }
  0xae   : > { %1555 = vmatpush1.bf16.xpose.msra.mxu0 %v1554_v47  ;;  %v1640_v47 = vpack.c.bf16 %v343_v43, %v341_v42  ;;  %v1722_v43 = vpack.c.bf16 %v422_v37, %v420_v36  ;;  %v381_v36 = vld [vmem:[%s2358_s12 + $0x508] sm:$0xff]  ;;  %v383_v37 = vld [vmem:[%s2358_s12 + $0x518] sm:$0xff] }
  0xaf   : > { %1619 = vmatpush1.bf16.xpose.msra.mxu1 %v1618_v48  ;;  %1557 = vmatprep.subr.bf16.mxu0 %v1556_v49  ;;  %v276_v48 = vld [vmem:[%s2358_s12 + $0x1c0] sm:$0xff]  ;;  %v278_v49 = vld [vmem:[%s2358_s12 + $0x1d0] sm:$0xff] }
  0xb0   : > { %1621 = vmatprep.subr.bf16.mxu1 %v1620_v50  ;;  %v340_v50 = vld [vmem:[%s2358_s12 + $0x3c0] sm:$0xff]  ;;  %v1578_v56 = vpack.c.bf16 %v278_v49, %v276_v48  ;;  %v426_v49 = vld [vmem:[%s2358_s12 + $0x670] sm:$0xff] }
  0xb1   : > { %v1642_v57 = vpack.c.bf16 %v342_v51, %v340_v50  ;;  %v424_v48 = vld [vmem:[%s2358_s12 + $0x660] sm:$0xff]  ;;  %v365_v50 = vld [vmem:[%s2358_s12 + $0x488] sm:$0xff]  ;;  %v367_v51 = vld [vmem:[%s2358_s12 + $0x498] sm:$0xff] }
  0xb6   : > { %1559 = vmatpush1.bf16.xpose.msra.mxu0 %v1558_v59  ;;  %v1644_v59 = vpack.c.bf16 %v347_v55, %v345_v54  ;;  %v1726_v55 = vpack.c.bf16 %v426_v49, %v424_v48  ;;  %v385_v48 = vld [vmem:[%s2358_s12 + $0x528] sm:$0xff]  ;;  %v387_v49 = vld [vmem:[%s2358_s12 + $0x538] sm:$0xff] }
  0xb7   : > { %1623 = vmatpush1.bf16.xpose.msra.mxu1 %v1622_v60  ;;  %1561 = vmatprep.subr.bf16.mxu0 %v1560_v61  ;;  %v280_v60 = vld [vmem:[%s2358_s12 + $0x1e0] sm:$0xff]  ;;  %v282_v61 = vld [vmem:[%s2358_s12 + $0x1f0] sm:$0xff] }
  0xb8   : > { %1625 = vmatprep.subr.bf16.mxu1 %v1624_v62  ;;  %v344_v62 = vld [vmem:[%s2358_s12 + $0x3e0] sm:$0xff]  ;;  %v1582_v4 = vpack.c.bf16 %v282_v61, %v280_v60  ;;  %v430_v61 = vld [vmem:[%s2358_s12 + $0x690] sm:$0xff] }
  0xb9   : > { %v1646_v5 = vpack.c.bf16 %v346_v63, %v344_v62  ;;  %v428_v60 = vld [vmem:[%s2358_s12 + $0x680] sm:$0xff]  ;;  %v369_v62 = vld [vmem:[%s2358_s12 + $0x4a8] sm:$0xff]  ;;  %v371_v63 = vld [vmem:[%s2358_s12 + $0x4b8] sm:$0xff] }
  0xbe   : > { %1563 = vmatpush1.bf16.xpose.msra.mxu0 %v1562_v7  ;;  %v1712_v7 = vpack.c.bf16 %v415_v3, %v413_v2  ;;  %v1730_v3 = vpack.c.bf16 %v430_v61, %v428_v60  ;;  %v389_v60 = vld [vmem:[%s2358_s12 + $0x548] sm:$0xff]  ;;  %v391_v61 = vld [vmem:[%s2358_s12 + $0x558] sm:$0xff] }
  0xbf   : > { %1627 = vmatpush1.bf16.xpose.msra.mxu1 %v1626_v8  ;;  %1565 = vmatprep.subr.bf16.mxu0 %v1564_v9  ;;  %v348_v8 = vld [vmem:[%s2358_s12 + $0x400] sm:$0xff]  ;;  %v350_v9 = vld [vmem:[%s2358_s12 + $0x410] sm:$0xff] }
  0xc0   : > { %1629 = vmatprep.subr.bf16.mxu1 %v1628_v10  ;;  %v412_v10 = vld [vmem:[%s2358_s12 + $0x600] sm:$0xff]  ;;  %v1650_v18 = vpack.c.bf16 %v350_v9, %v348_v8  ;;  %v434_v9 = vld [vmem:[%s2358_s12 + $0x6b0] sm:$0xff] }
  0xc1   : > { %v1714_v19 = vpack.c.bf16 %v414_v11, %v412_v10  ;;  %v432_v8 = vld [vmem:[%s2358_s12 + $0x6a0] sm:$0xff]  ;;  %v373_v10 = vld [vmem:[%s2358_s12 + $0x4c8] sm:$0xff]  ;;  %v375_v11 = vld [vmem:[%s2358_s12 + $0x4d8] sm:$0xff] }
  0xc6   : > { %1567 = vmatpush1.bf16.xpose.msra.mxu0 %v1566_v20  ;;  %v1652_v20 = vpack.c.bf16 %v355_v13, %v353_v12  ;;  %v437_v12 = vld [vmem:[%s2358_s12 + $0x6c8] sm:$0xff]  ;;  %v439_v13 = vld [vmem:[%s2358_s12 + $0x6d8] sm:$0xff] }
  0xc7   : > { %1631 = vmatpush1.bf16.xpose.msra.mxu1 %v1630_v21  ;;  %1569 = vmatprep.subr.bf16.mxu0 %v1568_v22  ;;  %v1716_v21 = vpack.c.bf16 %v419_v16, %v417_v15  ;;  %v352_v22 = vld [vmem:[%s2358_s12 + $0x420] sm:$0xff]  ;;  %v1734_v16 = vpack.c.bf16 %v434_v9, %v432_v8  ;;  %v393_v8 = vld [vmem:[%s2358_s12 + $0x568] sm:$0xff]  ;;  %v395_v9 = vld [vmem:[%s2358_s12 + $0x578] sm:$0xff] }
  0xc8   : > { %1633 = vmatprep.subr.bf16.mxu1 %v1632_v23  ;;  %v354_v23 = vld [vmem:[%s2358_s12 + $0x430] sm:$0xff] }
  0xc9   : > { %v1654_v30 = vpack.c.bf16 %v354_v23, %v352_v22  ;;  %v436_v22 = vld [vmem:[%s2358_s12 + $0x6c0] sm:$0xff]  ;;  %v438_v23 = vld [vmem:[%s2358_s12 + $0x6d0] sm:$0xff] }
  0xce   : > { %1571 = vmatpush1.bf16.xpose.msra.mxu0 %v1570_v32  ;;  %v1656_v32 = vpack.c.bf16 %v359_v27, %v357_v26  ;;  %v441_v26 = vld [vmem:[%s2358_s12 + $0x6e8] sm:$0xff]  ;;  %v443_v27 = vld [vmem:[%s2358_s12 + $0x6f8] sm:$0xff] }
  0xcf   : > { %1635 = vmatpush1.bf16.xpose.msra.mxu1 %v1634_v33  ;;  %1573 = vmatprep.subr.bf16.mxu0 %v1572_v34  ;;  %v1720_v33 = vpack.c.bf16 %v423_v29, %v421_v28  ;;  %v356_v34 = vld [vmem:[%s2358_s12 + $0x440] sm:$0xff]  ;;  %v1738_v29 = vpack.c.bf16 %v438_v23, %v436_v22  ;;  %v397_v22 = vld [vmem:[%s2358_s12 + $0x588] sm:$0xff]  ;;  %v399_v23 = vld [vmem:[%s2358_s12 + $0x598] sm:$0xff] }
  0xd0   : > { %1637 = vmatprep.subr.bf16.mxu1 %v1636_v35  ;;  %v358_v35 = vld [vmem:[%s2358_s12 + $0x450] sm:$0xff] }
  0xd1   : > { %v1658_v42 = vpack.c.bf16 %v358_v35, %v356_v34  ;;  %v440_v34 = vld [vmem:[%s2358_s12 + $0x6e0] sm:$0xff]  ;;  %v442_v35 = vld [vmem:[%s2358_s12 + $0x6f0] sm:$0xff] }
  0xd6   : > { %1575 = vmatpush1.bf16.xpose.msra.mxu0 %v1574_v44  ;;  %v1660_v44 = vpack.c.bf16 %v363_v39, %v361_v38  ;;  %v445_v38 = vld [vmem:[%s2358_s12 + $0x708] sm:$0xff]  ;;  %v447_v39 = vld [vmem:[%s2358_s12 + $0x718] sm:$0xff] }
  0xd7   : > { %1639 = vmatpush1.bf16.xpose.msra.mxu1 %v1638_v45  ;;  %1577 = vmatprep.subr.bf16.mxu0 %v1576_v46  ;;  %v1724_v45 = vpack.c.bf16 %v427_v41, %v425_v40  ;;  %v360_v46 = vld [vmem:[%s2358_s12 + $0x460] sm:$0xff]  ;;  %v1742_v41 = vpack.c.bf16 %v442_v35, %v440_v34  ;;  %v401_v34 = vld [vmem:[%s2358_s12 + $0x5a8] sm:$0xff]  ;;  %v403_v35 = vld [vmem:[%s2358_s12 + $0x5b8] sm:$0xff] }
  0xd8   : > { %1641 = vmatprep.subr.bf16.mxu1 %v1640_v47  ;;  %v362_v47 = vld [vmem:[%s2358_s12 + $0x470] sm:$0xff] }
  0xd9   : > { %v1662_v54 = vpack.c.bf16 %v362_v47, %v360_v46  ;;  %v444_v46 = vld [vmem:[%s2358_s12 + $0x700] sm:$0xff]  ;;  %v446_v47 = vld [vmem:[%s2358_s12 + $0x710] sm:$0xff] }
  0xde   : > { %1579 = vmatpush1.bf16.xpose.msra.mxu0 %v1578_v56  ;;  %v1664_v56 = vpack.c.bf16 %v367_v51, %v365_v50  ;;  %v449_v50 = vld [vmem:[%s2358_s12 + $0x728] sm:$0xff]  ;;  %v451_v51 = vld [vmem:[%s2358_s12 + $0x738] sm:$0xff] }
  0xdf   : > { %1643 = vmatpush1.bf16.xpose.msra.mxu1 %v1642_v57  ;;  %1581 = vmatprep.subr.bf16.mxu0 %v1580_v58  ;;  %v1728_v57 = vpack.c.bf16 %v431_v53, %v429_v52  ;;  %v364_v58 = vld [vmem:[%s2358_s12 + $0x480] sm:$0xff]  ;;  %v1746_v53 = vpack.c.bf16 %v446_v47, %v444_v46  ;;  %v405_v46 = vld [vmem:[%s2358_s12 + $0x5c8] sm:$0xff]  ;;  %v407_v47 = vld [vmem:[%s2358_s12 + $0x5d8] sm:$0xff] }
  0xe0   : > { %1645 = vmatprep.subr.bf16.mxu1 %v1644_v59  ;;  %v366_v59 = vld [vmem:[%s2358_s12 + $0x490] sm:$0xff] }
  0xe1   : > { %v1666_v2 = vpack.c.bf16 %v366_v59, %v364_v58  ;;  %v448_v58 = vld [vmem:[%s2358_s12 + $0x720] sm:$0xff]  ;;  %v450_v59 = vld [vmem:[%s2358_s12 + $0x730] sm:$0xff] }
  0xe6   : > { %1583 = vmatpush1.bf16.xpose.msra.mxu0 %v1582_v4  ;;  %v1668_v4 = vpack.c.bf16 %v371_v63, %v369_v62  ;;  %v453_v62 = vld [vmem:[%s2358_s12 + $0x748] sm:$0xff]  ;;  %v455_v63 = vld [vmem:[%s2358_s12 + $0x758] sm:$0xff] }
  0xe7   : > { %1647 = vmatpush1.bf16.xpose.msra.mxu1 %v1646_v5  ;;  %1649 = vmatprep.subr.bf16.mxu0 %v1648_v6  ;;  %v1732_v5 = vpack.c.bf16 %v435_v1, %v433_v0  ;;  %v368_v6 = vld [vmem:[%s2358_s12 + $0x4a0] sm:$0xff]  ;;  %v1750_v1 = vpack.c.bf16 %v450_v59, %v448_v58  ;;  %v409_v58 = vld [vmem:[%s2358_s12 + $0x5e8] sm:$0xff]  ;;  %v411_v59 = vld [vmem:[%s2358_s12 + $0x5f8] sm:$0xff] }
  0xe8   : > { %1713 = vmatprep.subr.bf16.mxu1 %v1712_v7  ;;  %v370_v7 = vld [vmem:[%s2358_s12 + $0x4b0] sm:$0xff] }
  0xe9   : > { %v1670_v15 = vpack.c.bf16 %v370_v7, %v368_v6  ;;  %v452_v6 = vld [vmem:[%s2358_s12 + $0x740] sm:$0xff]  ;;  %v454_v7 = vld [vmem:[%s2358_s12 + $0x750] sm:$0xff] }
  0xed   : > { %765 = vmatmul.mubr.f32.vlgmr.msra.gmra.mrb[0].mxu0 %v2512_v17 }
  0xee   : > { %836 = vmatmul.mubr.f32.vlgmr.msra.gmra.mrb[0].mxu1 %v2512_v17  ;;  %1651 = vmatpush1.bf16.xpose.msra.mxu0 %v1650_v18  ;;  %v1672_v18 = vpack.c.bf16 %v375_v11, %v373_v10  ;;  %v457_v10 = vld [vmem:[%s2358_s12 + $0x768] sm:$0xff]  ;;  %v459_v11 = vld [vmem:[%s2358_s12 + $0x778] sm:$0xff] }
  0xef   : > { %1715 = vmatpush1.bf16.xpose.msra.mxu1 %v1714_v19  ;;  %1653 = vmatprep.subr.bf16.mxu0 %v1652_v20  ;;  %v1736_v19 = vpack.c.bf16 %v439_v13, %v437_v12  ;;  %v372_v20 = vld [vmem:[%s2358_s12 + $0x4c0] sm:$0xff]  ;;  %v1754_v13 = vpack.c.bf16 %v454_v7, %v452_v6  ;;  %v477_v6 = vld [vmem:[%s2358_s12 + $0x808] sm:$0xff]  ;;  %v479_v7 = vld [vmem:[%s2358_s12 + $0x818] sm:$0xff] }
  0xf0   : > { %1717 = vmatprep.subr.bf16.mxu1 %v1716_v21  ;;  %906 = vmatprep.mubr.f32.mxu0 %v2420_v14  ;;  %v374_v21 = vld [vmem:[%s2358_s12 + $0x4d0] sm:$0xff] }
  0xf1   : > { %977 = vmatprep.mubr.f32.mxu1 %v2420_v14  ;;  %v1674_v28 = vpack.c.bf16 %v374_v21, %v372_v20  ;;  %v456_v20 = vld [vmem:[%s2358_s12 + $0x760] sm:$0xff]  ;;  %v458_v21 = vld [vmem:[%s2358_s12 + $0x770] sm:$0xff] }
  0xf6   : > { %1655 = vmatpush1.bf16.xpose.msra.mxu0 %v1654_v30  ;;  %v1676_v30 = vpack.c.bf16 %v379_v25, %v377_v24  ;;  %v461_v24 = vld [vmem:[%s2358_s12 + $0x788] sm:$0xff]  ;;  %v463_v25 = vld [vmem:[%s2358_s12 + $0x798] sm:$0xff] }
  0xf7   : > { %1719 = vmatpush1.bf16.xpose.msra.mxu1 %v1718_v31  ;;  %1657 = vmatprep.subr.bf16.mxu0 %v1656_v32  ;;  %v1740_v31 = vpack.c.bf16 %v443_v27, %v441_v26  ;;  %v376_v32 = vld [vmem:[%s2358_s12 + $0x4e0] sm:$0xff]  ;;  %v1758_v27 = vpack.c.bf16 %v458_v21, %v456_v20  ;;  %v481_v20 = vld [vmem:[%s2358_s12 + $0x828] sm:$0xff]  ;;  %v483_v21 = vld [vmem:[%s2358_s12 + $0x838] sm:$0xff] }
  0xf8   : > { %1721 = vmatprep.subr.bf16.mxu1 %v1720_v33  ;;  %v378_v33 = vld [vmem:[%s2358_s12 + $0x4f0] sm:$0xff] }
  0xf9   : > { %v1678_v40 = vpack.c.bf16 %v378_v33, %v376_v32  ;;  %v460_v32 = vld [vmem:[%s2358_s12 + $0x780] sm:$0xff]  ;;  %v462_v33 = vld [vmem:[%s2358_s12 + $0x790] sm:$0xff] }
  0xfe   : > { %1659 = vmatpush1.bf16.xpose.msra.mxu0 %v1658_v42  ;;  %v1680_v42 = vpack.c.bf16 %v383_v37, %v381_v36  ;;  %v465_v36 = vld [vmem:[%s2358_s12 + $0x7a8] sm:$0xff]  ;;  %v467_v37 = vld [vmem:[%s2358_s12 + $0x7b8] sm:$0xff] }
  0xff   : > { %1723 = vmatpush1.bf16.xpose.msra.mxu1 %v1722_v43  ;;  %1661 = vmatprep.subr.bf16.mxu0 %v1660_v44  ;;  %v1744_v43 = vpack.c.bf16 %v447_v39, %v445_v38  ;;  %v380_v44 = vld [vmem:[%s2358_s12 + $0x500] sm:$0xff]  ;;  %v1762_v39 = vpack.c.bf16 %v462_v33, %v460_v32  ;;  %v485_v32 = vld [vmem:[%s2358_s12 + $0x848] sm:$0xff]  ;;  %v487_v33 = vld [vmem:[%s2358_s12 + $0x858] sm:$0xff] }
 0x100   : > { %1725 = vmatprep.subr.bf16.mxu1 %v1724_v45  ;;  %v382_v45 = vld [vmem:[%s2358_s12 + $0x510] sm:$0xff] }
 0x101   : > { %v1682_v52 = vpack.c.bf16 %v382_v45, %v380_v44  ;;  %v464_v44 = vld [vmem:[%s2358_s12 + $0x7a0] sm:$0xff]  ;;  %v466_v45 = vld [vmem:[%s2358_s12 + $0x7b0] sm:$0xff] }
 0x106   : > { %1663 = vmatpush1.bf16.xpose.msra.mxu0 %v1662_v54  ;;  %v1684_v54 = vpack.c.bf16 %v387_v49, %v385_v48  ;;  %v469_v48 = vld [vmem:[%s2358_s12 + $0x7c8] sm:$0xff]  ;;  %v471_v49 = vld [vmem:[%s2358_s12 + $0x7d8] sm:$0xff] }
 0x107   : > { %1727 = vmatpush1.bf16.xpose.msra.mxu1 %v1726_v55  ;;  %1665 = vmatprep.subr.bf16.mxu0 %v1664_v56  ;;  %v1748_v55 = vpack.c.bf16 %v451_v51, %v449_v50  ;;  %v384_v56 = vld [vmem:[%s2358_s12 + $0x520] sm:$0xff]  ;;  %v1766_v51 = vpack.c.bf16 %v466_v45, %v464_v44  ;;  %v553_v44 = vld [vmem:[%s2358_s12 + $0xa68] sm:$0xff]  ;;  %v555_v45 = vld [vmem:[%s2358_s12 + $0xa78] sm:$0xff] }
 0x108   : > { %1729 = vmatprep.subr.bf16.mxu1 %v1728_v57  ;;  %v386_v57 = vld [vmem:[%s2358_s12 + $0x530] sm:$0xff] }
 0x109   : > { %v1686_v0 = vpack.c.bf16 %v386_v57, %v384_v56  ;;  %v468_v56 = vld [vmem:[%s2358_s12 + $0x7c0] sm:$0xff]  ;;  %v470_v57 = vld [vmem:[%s2358_s12 + $0x7d0] sm:$0xff] }
 0x10e   : > { %1667 = vmatpush1.bf16.xpose.msra.mxu0 %v1666_v2  ;;  %v1688_v2 = vpack.c.bf16 %v391_v61, %v389_v60  ;;  %v473_v60 = vld [vmem:[%s2358_s12 + $0x7e8] sm:$0xff]  ;;  %v475_v61 = vld [vmem:[%s2358_s12 + $0x7f8] sm:$0xff] }
 0x10f   : > { %1731 = vmatpush1.bf16.xpose.msra.mxu1 %v1730_v3  ;;  %1669 = vmatprep.subr.bf16.mxu0 %v1668_v4  ;;  %v1752_v3 = vpack.c.bf16 %v455_v63, %v453_v62  ;;  %v388_v4 = vld [vmem:[%s2358_s12 + $0x540] sm:$0xff]  ;;  %v1770_v63 = vpack.c.bf16 %v470_v57, %v468_v56  ;;  %v557_v56 = vld [vmem:[%s2358_s12 + $0xa88] sm:$0xff]  ;;  %v559_v57 = vld [vmem:[%s2358_s12 + $0xa98] sm:$0xff] }
 0x110   : > { %1733 = vmatprep.subr.bf16.mxu1 %v1732_v5  ;;  %v390_v5 = vld [vmem:[%s2358_s12 + $0x550] sm:$0xff] }
 0x111   : > { %v1690_v12 = vpack.c.bf16 %v390_v5, %v388_v4  ;;  %v472_v4 = vld [vmem:[%s2358_s12 + $0x7e0] sm:$0xff]  ;;  %v474_v5 = vld [vmem:[%s2358_s12 + $0x7f0] sm:$0xff] }
 0x116   : > { %1671 = vmatpush1.bf16.xpose.msra.mxu0 %v1670_v15  ;;  %v1692_v15 = vpack.c.bf16 %v395_v9, %v393_v8  ;;  %v541_v8 = vld [vmem:[%s2358_s12 + $0xa08] sm:$0xff]  ;;  %v543_v9 = vld [vmem:[%s2358_s12 + $0xa18] sm:$0xff] }
 0x117   : > { %1735 = vmatpush1.bf16.xpose.msra.mxu1 %v1734_v16  ;;  %1673 = vmatprep.subr.bf16.mxu0 %v1672_v18  ;;  %v1756_v16 = vpack.c.bf16 %v459_v11, %v457_v10  ;;  %v392_v18 = vld [vmem:[%s2358_s12 + $0x560] sm:$0xff]  ;;  %v1774_v11 = vpack.c.bf16 %v474_v5, %v472_v4  ;;  %v561_v4 = vld [vmem:[%s2358_s12 + $0xaa8] sm:$0xff]  ;;  %v563_v5 = vld [vmem:[%s2358_s12 + $0xab8] sm:$0xff] }
 0x118   : > { %1737 = vmatprep.subr.bf16.mxu1 %v1736_v19  ;;  %v394_v19 = vld [vmem:[%s2358_s12 + $0x570] sm:$0xff] }
 0x119   : > { %v1694_v26 = vpack.c.bf16 %v394_v19, %v392_v18  ;;  %v540_v18 = vld [vmem:[%s2358_s12 + $0xa00] sm:$0xff]  ;;  %v542_v19 = vld [vmem:[%s2358_s12 + $0xa10] sm:$0xff] }
 0x11e   : > { %1675 = vmatpush1.bf16.xpose.msra.mxu0 %v1674_v28  ;;  %v1696_v28 = vpack.c.bf16 %v399_v23, %v397_v22  ;;  %v545_v22 = vld [vmem:[%s2358_s12 + $0xa28] sm:$0xff]  ;;  %v547_v23 = vld [vmem:[%s2358_s12 + $0xa38] sm:$0xff] }
 0x11f   : > { %1739 = vmatpush1.bf16.xpose.msra.mxu1 %v1738_v29  ;;  %1677 = vmatprep.subr.bf16.mxu0 %v1676_v30  ;;  %v1760_v29 = vpack.c.bf16 %v463_v25, %v461_v24  ;;  %v396_v30 = vld [vmem:[%s2358_s12 + $0x580] sm:$0xff]  ;;  %v1842_v25 = vpack.c.bf16 %v542_v19, %v540_v18  ;;  %v565_v18 = vld [vmem:[%s2358_s12 + $0xac8] sm:$0xff]  ;;  %v567_v19 = vld [vmem:[%s2358_s12 + $0xad8] sm:$0xff] }
 0x120   : > { %1741 = vmatprep.subr.bf16.mxu1 %v1740_v31  ;;  %v398_v31 = vld [vmem:[%s2358_s12 + $0x590] sm:$0xff] }
 0x121   : > { %v1698_v38 = vpack.c.bf16 %v398_v31, %v396_v30  ;;  %v544_v30 = vld [vmem:[%s2358_s12 + $0xa20] sm:$0xff]  ;;  %v546_v31 = vld [vmem:[%s2358_s12 + $0xa30] sm:$0xff] }
 0x126   : > { %1679 = vmatpush1.bf16.xpose.msra.mxu0 %v1678_v40  ;;  %v1700_v40 = vpack.c.bf16 %v403_v35, %v401_v34  ;;  %v549_v34 = vld [vmem:[%s2358_s12 + $0xa48] sm:$0xff] }
 0x127   : > { %1743 = vmatpush1.bf16.xpose.msra.mxu1 %v1742_v41  ;;  %1681 = vmatprep.subr.bf16.mxu0 %v1680_v42  ;;  %v1764_v41 = vpack.c.bf16 %v467_v37, %v465_v36  ;;  %v400_v42 = vld [vmem:[%s2358_s12 + $0x5a0] sm:$0xff]  ;;  %v1846_v36 = vpack.c.bf16 %v546_v31, %v544_v30  ;;  %v1784_v37 = vpack.c.bf16 %v487_v33, %v485_v32  ;;  %v569_v30 = vld [vmem:[%s2358_s12 + $0xae8] sm:$0xff]  ;;  %v571_v31 = vld [vmem:[%s2358_s12 + $0xaf8] sm:$0xff] }
 0x128   : > { %1745 = vmatprep.subr.bf16.mxu1 %v1744_v43  ;;  %v402_v43 = vld [vmem:[%s2358_s12 + $0x5b0] sm:$0xff] }
 0x129   : > { %v1702_v50 = vpack.c.bf16 %v402_v43, %v400_v42  ;;  %v550_v42 = vld [vmem:[%s2358_s12 + $0xa50] sm:$0xff]  ;;  %v489_v43 = vld [vmem:[%s2358_s12 + $0x868] sm:$0xff] }
 0x12e   : > { %1683 = vmatpush1.bf16.xpose.msra.mxu0 %v1682_v52  ;;  %v1704_v52 = vpack.c.bf16 %v407_v47, %v405_v46 }
 0x12f   : > { %1747 = vmatpush1.bf16.xpose.msra.mxu1 %v1746_v53  ;;  %1685 = vmatprep.subr.bf16.mxu0 %v1684_v54  ;;  %v1768_v53 = vpack.c.bf16 %v471_v49, %v469_v48  ;;  %v404_v54 = vld [vmem:[%s2358_s12 + $0x5c0] sm:$0xff]  ;;  %v1852_v49 = vpack.c.bf16 %v555_v45, %v553_v44 }
 0x130   : > { %1749 = vmatprep.subr.bf16.mxu1 %v1748_v55  ;;  %v406_v55 = vld [vmem:[%s2358_s12 + $0x5d0] sm:$0xff] }
 0x131   : > { %v1706_v62 = vpack.c.bf16 %v406_v55, %v404_v54  ;;  %v493_v54 = vld [vmem:[%s2358_s12 + $0x888] sm:$0xff]  ;;  %v495_v55 = vld [vmem:[%s2358_s12 + $0x898] sm:$0xff] }
 0x136   : > { %1687 = vmatpush1.bf16.xpose.msra.mxu0 %v1686_v0  ;;  %v1708_v0 = vpack.c.bf16 %v411_v59, %v409_v58 }
 0x137   : > { %1751 = vmatpush1.bf16.xpose.msra.mxu1 %v1750_v1  ;;  %1689 = vmatprep.subr.bf16.mxu0 %v1688_v2  ;;  %v1772_v1 = vpack.c.bf16 %v475_v61, %v473_v60  ;;  %v408_v2 = vld [vmem:[%s2358_s12 + $0x5e0] sm:$0xff]  ;;  %v1792_v60 = vpack.c.bf16 %v495_v55, %v493_v54  ;;  %v1856_v61 = vpack.c.bf16 %v559_v57, %v557_v56 }
 0x138   : > { %1753 = vmatprep.subr.bf16.mxu1 %v1752_v3  ;;  %v410_v3 = vld [vmem:[%s2358_s12 + $0x5f0] sm:$0xff] }
 0x139   : > { %v1710_v10 = vpack.c.bf16 %v410_v3, %v408_v2  ;;  %v497_v2 = vld [vmem:[%s2358_s12 + $0x8a8] sm:$0xff]  ;;  %v499_v3 = vld [vmem:[%s2358_s12 + $0x8b8] sm:$0xff] }
 0x13e   : > { %1691 = vmatpush1.bf16.xpose.msra.mxu0 %v1690_v12  ;;  %v1776_v12 = vpack.c.bf16 %v479_v7, %v477_v6 }
 0x13f   : > { %1755 = vmatpush1.bf16.xpose.msra.mxu1 %v1754_v13  ;;  %1693 = vmatprep.subr.bf16.mxu0 %v1692_v15  ;;  %v1840_v13 = vpack.c.bf16 %v543_v9, %v541_v8  ;;  %v476_v15 = vld [vmem:[%s2358_s12 + $0x800] sm:$0xff]  ;;  %v1796_v8 = vpack.c.bf16 %v499_v3, %v497_v2  ;;  %v1860_v9 = vpack.c.bf16 %v563_v5, %v561_v4 }
 0x140   : > { %1757 = vmatprep.subr.bf16.mxu1 %v1756_v16  ;;  %v478_v16 = vld [vmem:[%s2358_s12 + $0x810] sm:$0xff] }
 0x141   : > { %v1778_v24 = vpack.c.bf16 %v478_v16, %v476_v15  ;;  %v501_v15 = vld [vmem:[%s2358_s12 + $0x8c8] sm:$0xff]  ;;  %v503_v16 = vld [vmem:[%s2358_s12 + $0x8d8] sm:$0xff] }
 0x146   : > { %1695 = vmatpush1.bf16.xpose.msra.mxu0 %v1694_v26  ;;  %v1780_v26 = vpack.c.bf16 %v483_v21, %v481_v20 }
 0x147   : > { %1759 = vmatpush1.bf16.xpose.msra.mxu1 %v1758_v27  ;;  %1697 = vmatprep.subr.bf16.mxu0 %v1696_v28  ;;  %v1844_v27 = vpack.c.bf16 %v547_v23, %v545_v22  ;;  %v480_v28 = vld [vmem:[%s2358_s12 + $0x820] sm:$0xff]  ;;  %v1800_v22 = vpack.c.bf16 %v503_v16, %v501_v15  ;;  %v1864_v23 = vpack.c.bf16 %v567_v19, %v565_v18  ;;  %v2191_v16 = vmov 1966171168  }
 0x148   : > { %1761 = vmatprep.subr.bf16.mxu1 %v1760_v29  ;;  %v482_v29 = vld [vmem:[%s2358_s12 + $0x830] sm:$0xff]  ;;  %v1304_v18 = vunpack.c.l.s4 %v2191_v16  ;;  %v1306_v19 = vlaneseq  ;;  %v539_v16 = vld [vmem:[%s2358_s12 + $0x9f8] sm:$0xff] }
 0x149   : > { %v1782_v35 = vpack.c.bf16 %v482_v29, %v480_v28  ;;  %v505_v28 = vld [vmem:[%s2358_s12 + $0x8e8] sm:$0xff]  ;;  %v507_v29 = vld [vmem:[%s2358_s12 + $0x8f8] sm:$0xff] }
 0x14a   : > { %vm1401_vm0 = vcmp.lt.s32.totalorder %v1306_v19, 896 }
 0x14e   : > { %1699 = vmatpush1.bf16.xpose.msra.mxu0 %v1698_v38 }
 0x14f   : > { %1763 = vmatpush1.bf16.xpose.msra.mxu1 %v1762_v39  ;;  %1701 = vmatprep.subr.bf16.mxu0 %v1700_v40  ;;  %v484_v39 = vld [vmem:[%s2358_s12 + $0x840] sm:$0xff]  ;;  %v486_v40 = vld [vmem:[%s2358_s12 + $0x850] sm:$0xff] }
 0x150   : > { %1765 = vmatprep.subr.bf16.mxu1 %v1764_v41  ;;  %v548_v41 = vld [vmem:[%s2358_s12 + $0xa40] sm:$0xff]  ;;  %v1786_v46 = vpack.c.bf16 %v486_v40, %v484_v39  ;;  %v509_v39 = vld [vmem:[%s2358_s12 + $0x908] sm:$0xff]  ;;  %v511_v40 = vld [vmem:[%s2358_s12 + $0x918] sm:$0xff] }
 0x151   : > { %v1850_v47 = vpack.c.bf16 %v550_v42, %v548_v41  ;;  %v573_v41 = vld [vmem:[%s2358_s12 + $0xb08] sm:$0xff]  ;;  %v575_v42 = vld [vmem:[%s2358_s12 + $0xb18] sm:$0xff]  ;;  %v1808_v44 = vpack.c.bf16 %v511_v40, %v509_v39 }
 0x152   : > { %v1872_v45 = vpack.c.bf16 %v575_v42, %v573_v41 }
 0x156   : > { %1703 = vmatpush1.bf16.xpose.msra.mxu0 %v1702_v50  ;;  %v488_v50 = vld [vmem:[%s2358_s12 + $0x860] sm:$0xff] }
 0x157   : > { %1767 = vmatpush1.bf16.xpose.msra.mxu1 %v1766_v51  ;;  %1705 = vmatprep.subr.bf16.mxu0 %v1704_v52  ;;  %v490_v51 = vld [vmem:[%s2358_s12 + $0x870] sm:$0xff]  ;;  %v552_v52 = vld [vmem:[%s2358_s12 + $0xa60] sm:$0xff] }
 0x158   : > { %1769 = vmatprep.subr.bf16.mxu1 %v1768_v53  ;;  %v554_v53 = vld [vmem:[%s2358_s12 + $0xa70] sm:$0xff]  ;;  %v1790_v58 = vpack.c.bf16 %v490_v51, %v488_v50  ;;  %v513_v50 = vld [vmem:[%s2358_s12 + $0x928] sm:$0xff]  ;;  %v515_v51 = vld [vmem:[%s2358_s12 + $0x938] sm:$0xff] }
 0x159   : > { %v1854_v59 = vpack.c.bf16 %v554_v53, %v552_v52  ;;  %v577_v52 = vld [vmem:[%s2358_s12 + $0xb28] sm:$0xff]  ;;  %v579_v53 = vld [vmem:[%s2358_s12 + $0xb38] sm:$0xff]  ;;  %v1812_v56 = vpack.c.bf16 %v515_v51, %v513_v50  ;;  %v526_v50 = vld [vmem:[%s2358_s12 + $0x990] sm:$0xff] }
 0x15a   : > { %v1876_v57 = vpack.c.bf16 %v579_v53, %v577_v52  ;;  %v588_v51 = vld [vmem:[%s2358_s12 + $0xb80] sm:$0xff]  ;;  %v590_v52 = vld [vmem:[%s2358_s12 + $0xb90] sm:$0xff]  ;;  %v529_v53 = vld [vmem:[%s2358_s12 + $0x9a8] sm:$0xff] }
 0x15e   : > { %1707 = vmatpush1.bf16.xpose.msra.mxu0 %v1706_v62  ;;  %v492_v62 = vld [vmem:[%s2358_s12 + $0x880] sm:$0xff] }
 0x15f   : > { %1771 = vmatpush1.bf16.xpose.msra.mxu1 %v1770_v63  ;;  %1709 = vmatprep.subr.bf16.mxu0 %v1708_v0  ;;  %v494_v63 = vld [vmem:[%s2358_s12 + $0x890] sm:$0xff]  ;;  %v556_v0 = vld [vmem:[%s2358_s12 + $0xa80] sm:$0xff] }
 0x160   : > { %1773 = vmatprep.subr.bf16.mxu1 %v1772_v1  ;;  %v558_v1 = vld [vmem:[%s2358_s12 + $0xa90] sm:$0xff]  ;;  %v1794_v6 = vpack.c.bf16 %v494_v63, %v492_v62  ;;  %v517_v62 = vld [vmem:[%s2358_s12 + $0x948] sm:$0xff]  ;;  %v519_v63 = vld [vmem:[%s2358_s12 + $0x958] sm:$0xff] }
 0x161   : > { %v1858_v7 = vpack.c.bf16 %v558_v1, %v556_v0  ;;  %v581_v0 = vld [vmem:[%s2358_s12 + $0xb48] sm:$0xff]  ;;  %v583_v1 = vld [vmem:[%s2358_s12 + $0xb58] sm:$0xff]  ;;  %v1816_v4 = vpack.c.bf16 %v519_v63, %v517_v62  ;;  %v528_v62 = vld [vmem:[%s2358_s12 + $0x9a0] sm:$0xff] }
 0x162   : > { %v1880_v5 = vpack.c.bf16 %v583_v1, %v581_v0  ;;  %v530_v63 = vld [vmem:[%s2358_s12 + $0x9b0] sm:$0xff]  ;;  %v592_v0 = vld [vmem:[%s2358_s12 + $0xba0] sm:$0xff] }
 0x163   : > { %v594_v1 = vld [vmem:[%s2358_s12 + $0xbb0] sm:$0xff] }
 0x166   : > { %1711 = vmatpush1.bf16.xpose.msra.mxu0 %v1710_v10  ;;  %v496_v10 = vld [vmem:[%s2358_s12 + $0x8a0] sm:$0xff] }
 0x167   : > { %1775 = vmatpush1.bf16.xpose.msra.mxu1 %v1774_v11  ;;  %1777 = vmatprep.subr.bf16.mxu0 %v1776_v12  ;;  %v498_v11 = vld [vmem:[%s2358_s12 + $0x8b0] sm:$0xff]  ;;  %v560_v12 = vld [vmem:[%s2358_s12 + $0xaa0] sm:$0xff] }
 0x168   : > { %1841 = vmatprep.subr.bf16.mxu1 %v1840_v13  ;;  %v562_v13 = vld [vmem:[%s2358_s12 + $0xab0] sm:$0xff]  ;;  %v1798_v20 = vpack.c.bf16 %v498_v11, %v496_v10  ;;  %v521_v10 = vld [vmem:[%s2358_s12 + $0x968] sm:$0xff]  ;;  %v523_v11 = vld [vmem:[%s2358_s12 + $0x978] sm:$0xff] }
 0x169   : > { %v1862_v21 = vpack.c.bf16 %v562_v13, %v560_v12  ;;  %v585_v12 = vld [vmem:[%s2358_s12 + $0xb68] sm:$0xff]  ;;  %v587_v13 = vld [vmem:[%s2358_s12 + $0xb78] sm:$0xff] }
 0x16d   : > { %907 = vmatmul.mubr.f32.vlgmr.msra.gmra.mrb[2].mxu0 %v2512_v17 }
 0x16e   : > { %978 = vmatmul.mubr.f32.vlgmr.msra.gmra.mrb[2].mxu1 %v2512_v17  ;;  %1779 = vmatpush1.bf16.xpose.msra.mxu0 %v1778_v24  ;;  %v551_v17 = vld [vmem:[%s2358_s12 + $0xa58] sm:$0xff]  ;;  %v500_v24 = vld [vmem:[%s2358_s12 + $0x8c0] sm:$0xff] }
 0x16f   : > { %1843 = vmatpush1.bf16.xpose.msra.mxu1 %v1842_v25  ;;  %1781 = vmatprep.subr.bf16.mxu0 %v1780_v26  ;;  %v1848_v38 = vpack.c.bf16 %v551_v17, %v549_v34  ;;  %v502_v25 = vld [vmem:[%s2358_s12 + $0x8d0] sm:$0xff]  ;;  %v564_v26 = vld [vmem:[%s2358_s12 + $0xac0] sm:$0xff]  ;;  %v1804_v34 = vpack.c.bf16 %v507_v29, %v505_v28  ;;  %v1868_v17 = vpack.c.bf16 %v571_v31, %v569_v30  ;;  %v525_v31 = vld [vmem:[%s2358_s12 + $0x988] sm:$0xff] }
 0x170   : > { %1845 = vmatprep.subr.bf16.mxu1 %v1844_v27  ;;  %1048 = vmatprep.mubr.f32.mxu0 %v2420_v14  ;;  %v566_v27 = vld [vmem:[%s2358_s12 + $0xad0] sm:$0xff]  ;;  %v1802_v32 = vpack.c.bf16 %v502_v25, %v500_v24  ;;  %v1305_v24 = vunpack.c.0.s8 %v1304_v18  ;;  %v1307_v25 = vshrl.u32 %v1306_v19, 7  ;;  %v584_v28 = vld [vmem:[%s2358_s12 + $0xb60] sm:$0xff]  ;;  %v601_v18 = vld [vmem:[%s2358_s12 + $0xbe8] sm:$0xff] }
 0x171   : > { %1119 = vmatprep.mubr.f32.mxu1 %v2420_v14  ;;  %v491_v14 = vld [vmem:[%s2358_s12 + $0x878] sm:$0xff]  ;;  %v1866_v33 = vpack.c.bf16 %v566_v27, %v564_v26  ;;  %v520_v26 = vld [vmem:[%s2358_s12 + $0x960] sm:$0xff]  ;;  %v522_v27 = vld [vmem:[%s2358_s12 + $0x970] sm:$0xff] }
 0x172   : > { %v1788_v48 = vpack.c.bf16 %v491_v14, %v489_v43  ;;  %v586_v30 = vld [vmem:[%s2358_s12 + $0xb70] sm:$0xff]  ;;  %v2744_v39 = vsub.s32 %v1305_v24, %v1307_v25  ;;  %v1822_v41 = vpack.c.bf16 %v522_v27, %v520_v26  ;;  %v536_v26 = vld [vmem:[%s2358_s12 + $0x9e0] sm:$0xff] }
 0x173   : > { %v538_v27 = vld [vmem:[%s2358_s12 + $0x9f0] sm:$0xff] }
 0x176   : > { %1783 = vmatpush1.bf16.xpose.msra.mxu0 %v1782_v35  ;;  %v504_v35 = vld [vmem:[%s2358_s12 + $0x8e0] sm:$0xff] }
 0x177   : > { %1847 = vmatpush1.bf16.xpose.msra.mxu1 %v1846_v36  ;;  %1785 = vmatprep.subr.bf16.mxu0 %v1784_v37  ;;  %v506_v36 = vld [vmem:[%s2358_s12 + $0x8f0] sm:$0xff]  ;;  %v568_v37 = vld [vmem:[%s2358_s12 + $0xae0] sm:$0xff] }
 0x178   : > { %1849 = vmatprep.subr.bf16.mxu1 %v1848_v38  ;;  %v570_v38 = vld [vmem:[%s2358_s12 + $0xaf0] sm:$0xff]  ;;  %v1806_v43 = vpack.c.bf16 %v506_v36, %v504_v35  ;;  %v589_v35 = vld [vmem:[%s2358_s12 + $0xb88] sm:$0xff]  ;;  %v591_v36 = vld [vmem:[%s2358_s12 + $0xb98] sm:$0xff] }
 0x179   : > { %v1870_v14 = vpack.c.bf16 %v570_v38, %v568_v37 }
 0x17e   : > { %1787 = vmatpush1.bf16.xpose.msra.mxu0 %v1786_v46  ;;  %v508_v46 = vld [vmem:[%s2358_s12 + $0x900] sm:$0xff] }
 0x17f   : > { %1851 = vmatpush1.bf16.xpose.msra.mxu1 %v1850_v47  ;;  %1789 = vmatprep.subr.bf16.mxu0 %v1788_v48  ;;  %v510_v47 = vld [vmem:[%s2358_s12 + $0x910] sm:$0xff]  ;;  %v572_v48 = vld [vmem:[%s2358_s12 + $0xb00] sm:$0xff] }
 0x180   : > { %1853 = vmatprep.subr.bf16.mxu1 %v1852_v49  ;;  %v574_v49 = vld [vmem:[%s2358_s12 + $0xb10] sm:$0xff]  ;;  %v1810_v54 = vpack.c.bf16 %v510_v47, %v508_v46 }
 0x181   : > { %v1874_v55 = vpack.c.bf16 %v574_v49, %v572_v48  ;;  %v524_v49 = vld [vmem:[%s2358_s12 + $0x980] sm:$0xff] }
 0x186   : > { %1791 = vmatpush1.bf16.xpose.msra.mxu0 %v1790_v58  ;;  %v512_v58 = vld [vmem:[%s2358_s12 + $0x920] sm:$0xff] }
 0x187   : > { %1855 = vmatpush1.bf16.xpose.msra.mxu1 %v1854_v59  ;;  %1793 = vmatprep.subr.bf16.mxu0 %v1792_v60  ;;  %v514_v59 = vld [vmem:[%s2358_s12 + $0x930] sm:$0xff]  ;;  %v576_v60 = vld [vmem:[%s2358_s12 + $0xb20] sm:$0xff] }
 0x188   : > { %1857 = vmatprep.subr.bf16.mxu1 %v1856_v61  ;;  %v578_v61 = vld [vmem:[%s2358_s12 + $0xb30] sm:$0xff]  ;;  %v1814_v2 = vpack.c.bf16 %v514_v59, %v512_v58  ;;  %v1826_v58 = vpack.c.bf16 %v526_v50, %v524_v49  ;;  %v1890_v59 = vpack.c.bf16 %v590_v52, %v588_v51  ;;  %v2795_v51 = vld [vmem:[#allocation6] sm:$0xff] }
 0x189   : > { %v1878_v3 = vpack.c.bf16 %v578_v61, %v576_v60  ;;  %v608_v52 = vld [vmem:[%s2358_s12 + $0xc20] sm:$0xff] }
 0x18e   : > { %1795 = vmatpush1.bf16.xpose.msra.mxu0 %v1794_v6  ;;  %v516_v6 = vld [vmem:[%s2358_s12 + $0x940] sm:$0xff] }
 0x18f   : > { %1859 = vmatpush1.bf16.xpose.msra.mxu1 %v1858_v7  ;;  %1797 = vmatprep.subr.bf16.mxu0 %v1796_v8  ;;  %v518_v7 = vld [vmem:[%s2358_s12 + $0x950] sm:$0xff]  ;;  %v580_v8 = vld [vmem:[%s2358_s12 + $0xb40] sm:$0xff] }
 0x190   : > { %1861 = vmatprep.subr.bf16.mxu1 %v1860_v9  ;;  %v582_v9 = vld [vmem:[%s2358_s12 + $0xb50] sm:$0xff]  ;;  %v1818_v15 = vpack.c.bf16 %v518_v7, %v516_v6  ;;  %v1830_v6 = vpack.c.bf16 %v530_v63, %v528_v62  ;;  %v1894_v7 = vpack.c.bf16 %v594_v1, %v592_v0 }
 0x196   : > { %1799 = vmatpush1.bf16.xpose.msra.mxu0 %v1798_v20  ;;  %v1882_v20 = vpack.c.bf16 %v582_v9, %v580_v8 }
 0x197   : > { %1863 = vmatpush1.bf16.xpose.msra.mxu1 %v1862_v21  ;;  %1801 = vmatprep.subr.bf16.mxu0 %v1800_v22  ;;  %v1820_v21 = vpack.c.bf16 %v523_v11, %v521_v10  ;;  %v1884_v22 = vpack.c.bf16 %v587_v13, %v585_v12  ;;  %v532_v10 = vld [vmem:[%s2358_s12 + $0x9c0] sm:$0xff]  ;;  %v534_v11 = vld [vmem:[%s2358_s12 + $0x9d0] sm:$0xff] }
 0x198   : > { %1865 = vmatprep.subr.bf16.mxu1 %v1864_v23  ;;  %v2730_v23 = vstv %s1267_s24  ;;  %v596_v12 = vld [vmem:[%s2358_s12 + $0xbc0] sm:$0xff]  ;;  %v598_v13 = vld [vmem:[%s2358_s12 + $0xbd0] sm:$0xff] }
 0x19e   : > { %1803 = vmatpush1.bf16.xpose.msra.mxu0 %v1802_v32  ;;  %v527_v32 = vld [vmem:[%s2358_s12 + $0x998] sm:$0xff] }
 0x19f   : > { %1867 = vmatpush1.bf16.xpose.msra.mxu1 %v1866_v33  ;;  %1805 = vmatprep.subr.bf16.mxu0 %v1804_v34 }
 0x1a0   : > { %1869 = vmatprep.subr.bf16.mxu1 %v1868_v17 }
 0x1a6   : > { %1807 = vmatpush1.bf16.xpose.msra.mxu0 %v1806_v43  ;;  %v1886_v43 = vpack.c.bf16 %v586_v30, %v584_v28  ;;  %v600_v28 = vld [vmem:[%s2358_s12 + $0xbe0] sm:$0xff]  ;;  %v605_v30 = vld [vmem:[%s2358_s12 + $0xc08] sm:$0xff] }
 0x1a7   : > { %1871 = vmatpush1.bf16.xpose.msra.mxu1 %v1870_v14  ;;  %1809 = vmatprep.subr.bf16.mxu0 %v1808_v44  ;;  %v1824_v14 = vpack.c.bf16 %v527_v32, %v525_v31  ;;  %v607_v31 = vld [vmem:[%s2358_s12 + $0xc18] sm:$0xff]  ;;  %v669_v32 = vld [vmem:[%s2358_s12 + $0xe08] sm:$0xff] }
 0x1a8   : > { %1873 = vmatprep.subr.bf16.mxu1 %v1872_v45  ;;  %v1888_v45 = vpack.c.bf16 %v591_v36, %v589_v35  ;;  %v1904_v35 = vpack.c.bf16 %v607_v31, %v605_v30  ;;  %v620_v30 = vld [vmem:[%s2358_s12 + $0xc80] sm:$0xff]  ;;  %v622_v31 = vld [vmem:[%s2358_s12 + $0xc90] sm:$0xff] }
 0x1ae   : > { %1811 = vmatpush1.bf16.xpose.msra.mxu0 %v1810_v54  ;;  %v531_v54 = vld [vmem:[%s2358_s12 + $0x9b8] sm:$0xff] }
 0x1af   : > { %1875 = vmatpush1.bf16.xpose.msra.mxu1 %v1874_v55  ;;  %1813 = vmatprep.subr.bf16.mxu0 %v1812_v56  ;;  %v593_v56 = vld [vmem:[%s2358_s12 + $0xba8] sm:$0xff]  ;;  %v1828_v60 = vpack.c.bf16 %v531_v54, %v529_v53  ;;  %v610_v53 = vld [vmem:[%s2358_s12 + $0xc30] sm:$0xff] }
 0x1b0   : > { %1877 = vmatprep.subr.bf16.mxu1 %v1876_v57  ;;  %v595_v57 = vld [vmem:[%s2358_s12 + $0xbb8] sm:$0xff]  ;;  %v613_v54 = vld [vmem:[%s2358_s12 + $0xc48] sm:$0xff]  ;;  %v1910_v62 = vpack.c.bf16 %v610_v53, %v608_v52 }
 0x1b1   : > { %v1892_v61 = vpack.c.bf16 %v595_v57, %v593_v56  ;;  %v615_v56 = vld [vmem:[%s2358_s12 + $0xc58] sm:$0xff]  ;;  %v672_v57 = vld [vmem:[%s2358_s12 + $0xe20] sm:$0xff] }
 0x1b2   : > { %v1912_v63 = vpack.c.bf16 %v615_v56, %v613_v54 }
 0x1b6   : > { %1815 = vmatpush1.bf16.xpose.msra.mxu0 %v1814_v2  ;;  %v533_v2 = vld [vmem:[%s2358_s12 + $0x9c8] sm:$0xff] }
 0x1b7   : > { %1879 = vmatpush1.bf16.xpose.msra.mxu1 %v1878_v3  ;;  %1817 = vmatprep.subr.bf16.mxu0 %v1816_v4  ;;  %v535_v3 = vld [vmem:[%s2358_s12 + $0x9d8] sm:$0xff]  ;;  %v597_v4 = vld [vmem:[%s2358_s12 + $0xbc8] sm:$0xff] }
 0x1b8   : > { %1881 = vmatprep.subr.bf16.mxu1 %v1880_v5  ;;  %v599_v5 = vld [vmem:[%s2358_s12 + $0xbd8] sm:$0xff]  ;;  %v1832_v8 = vpack.c.bf16 %v535_v3, %v533_v2  ;;  %v612_v2 = vld [vmem:[%s2358_s12 + $0xc40] sm:$0xff]  ;;  %v614_v3 = vld [vmem:[%s2358_s12 + $0xc50] sm:$0xff] }
 0x1b9   : > { %v1896_v9 = vpack.c.bf16 %v599_v5, %v597_v4  ;;  %v617_v4 = vld [vmem:[%s2358_s12 + $0xc68] sm:$0xff]  ;;  %v619_v5 = vld [vmem:[%s2358_s12 + $0xc78] sm:$0xff] }
 0x1be   : > { %1819 = vmatpush1.bf16.xpose.msra.mxu0 %v1818_v15  ;;  %v537_v15 = vld [vmem:[%s2358_s12 + $0x9e8] sm:$0xff] }
 0x1bf   : > { %1883 = vmatpush1.bf16.xpose.msra.mxu1 %v1882_v20  ;;  %1821 = vmatprep.subr.bf16.mxu0 %v1820_v21  ;;  %v603_v20 = vld [vmem:[%s2358_s12 + $0xbf8] sm:$0xff]  ;;  %v1834_v21 = vpack.c.bf16 %v534_v11, %v532_v10  ;;  %v1836_v24 = vpack.c.bf16 %v539_v16, %v537_v15  ;;  %v1914_v10 = vpack.c.bf16 %v614_v3, %v612_v2  ;;  %v616_v15 = vld [vmem:[%s2358_s12 + $0xc60] sm:$0xff]  ;;  %v618_v16 = vld [vmem:[%s2358_s12 + $0xc70] sm:$0xff] }
 0x1c0   : > { %v766_v29 = vpop.f32.mrb[0].mxu0  ;;  %1885 = vmatprep.subr.bf16.mxu1 %v1884_v22  ;;  %v1898_v22 = vpack.c.bf16 %v598_v13, %v596_v12  ;;  %v1900_v25 = vpack.c.bf16 %v603_v20, %v601_v18  ;;  %v1916_v11 = vpack.c.bf16 %v619_v5, %v617_v4  ;;  %v621_v18 = vld [vmem:[%s2358_s12 + $0xc88] sm:$0xff]  ;;  %v623_v20 = vld [vmem:[%s2358_s12 + $0xc98] sm:$0xff]  ;;  %v632_v5 = vld [vmem:[%s2358_s12 + $0xce0] sm:$0xff] }
 0x1c1   : > { %v1269_v33 = vadd.f32 %v2730_v23, %v766_v29  ;;  %v837_v34 = vpop.f32.mrb[0].mxu1  ;;  %v768_v17 = vpop.f32.mrb[1].mxu0  ;;  %v602_v29 = vld [vmem:[%s2358_s12 + $0xbf0] sm:$0xff] }
 0x1c2   : > { %v1271_v37 = vadd.f32 %v2730_v23, %v837_v34  ;;  %v1270_v38 = vadd.f32 %v2730_v23, %v768_v17  ;;  %v839_v40 = vpop.f32.mrb[1].mxu1  ;;  %v1838_v34 = vpack.c.bf16 %v538_v27, %v536_v26  ;;  %v1902_v17 = vpack.c.bf16 %v602_v29, %v600_v28 }
 0x1c3   : > { %v1272_v42 = vadd.f32 %v2730_v23, %v839_v40  ;;  %v609_v40 = vld [vmem:[%s2358_s12 + $0xc28] sm:$0xff]  ;;  %v1918_v26 = vpack.c.bf16 %v618_v16, %v616_v15  ;;  %v1920_v27 = vpack.c.bf16 %v623_v20, %v621_v18  ;;  %v636_v15 = vld [vmem:[%s2358_s12 + $0xd00] sm:$0xff]  ;;  %v638_v16 = vld [vmem:[%s2358_s12 + $0xd10] sm:$0xff] }
 0x1c4   : > { %v1299_v44 = vcombine.low %v1269_v33, %v1270_v38  ;;  %v671_v33 = vld [vmem:[%s2358_s12 + $0xe18] sm:$0xff]  ;;  %v606_v38 = vld [vmem:[%s2358_s12 + $0xc10] sm:$0xff]  ;;  %v641_v18 = vld [vmem:[%s2358_s12 + $0xd28] sm:$0xff] }
 0x1c5   : > { %v1300_v46 = vcombine.low %v1271_v37, %v1272_v42  ;;  %v1968_v36 = vpack.c.bf16 %v671_v33, %v669_v32  ;;  %v604_v37 = vld [vmem:[%s2358_s12 + $0xc00] sm:$0xff]  ;;  %v625_v32 = vld [vmem:[%s2358_s12 + $0xca8] sm:$0xff]  ;;  %v627_v33 = vld [vmem:[%s2358_s12 + $0xcb8] sm:$0xff] }
 0x1c6   : > { %v2748_v47 = vrot.slane %v1299_v44, %v2744_v39  ;;  %1823 = vmatpush1.bf16.xpose.msra.mxu0 %v1822_v41  ;;  %v611_v41 = vld [vmem:[%s2358_s12 + $0xc38] sm:$0xff]  ;;  %v668_v42 = vld [vmem:[%s2358_s12 + $0xe00] sm:$0xff] }
 0x1c7   : > { %v2751_v48 = vrot.slane %v1300_v46, %v2744_v39  ;;  %1887 = vmatpush1.bf16.xpose.msra.mxu1 %v1886_v43  ;;  %1825 = vmatprep.subr.bf16.mxu0 %v1824_v14  ;;  %v670_v43 = vld [vmem:[%s2358_s12 + $0xe10] sm:$0xff]  ;;  %v673_v14 = vld [vmem:[%s2358_s12 + $0xe28] sm:$0xff]  ;;  %v675_v44 = vld [vmem:[%s2358_s12 + $0xe38] sm:$0xff]  ;;  %v1908_v46 = vpack.c.bf16 %v611_v41, %v609_v40 }
 0x1c8   : > { %1889 = vmatprep.subr.bf16.mxu1 %v1888_v45  ;;  %v1906_v45 = vpack.c.bf16 %v606_v38, %v604_v37  ;;  %v1970_v49 = vpack.c.bf16 %v670_v43, %v668_v42  ;;  %v1972_v50 = vpack.c.bf16 %v675_v44, %v673_v14  ;;  %v1922_v37 = vpack.c.bf16 %v622_v31, %v620_v30  ;;  %v624_v42 = vld [vmem:[%s2358_s12 + $0xca0] sm:$0xff]  ;;  %v626_v43 = vld [vmem:[%s2358_s12 + $0xcb0] sm:$0xff]  ;;  %v629_v14 = vld [vmem:[%s2358_s12 + $0xcc8] sm:$0xff] }
 0x1c9   : > { %v1331_v55 = vcombine.low %v2748_v47, %v2751_v48  ;;  %v1924_v38 = vpack.c.bf16 %v627_v33, %v625_v32  ;;  %v631_v44 = vld [vmem:[%s2358_s12 + $0xcd8] sm:$0xff]  ;;  %v1926_v52 = vpack.c.bf16 %v626_v43, %v624_v42  ;;  %v644_v30 = vld [vmem:[%s2358_s12 + $0xd40] sm:$0xff]  ;;  %v646_v31 = vld [vmem:[%s2358_s12 + $0xd50] sm:$0xff] }
 0x1ca   : > { %v1928_v53 = vpack.c.bf16 %v631_v44, %v629_v14  ;;  %v643_v20 = vld [vmem:[%s2358_s12 + $0xd38] sm:$0xff]  ;;  %v649_v32 = vld [vmem:[%s2358_s12 + $0xd68] sm:$0xff] }
 0x1cb   : > { %v651_v33 = vld [vmem:[%s2358_s12 + $0xd78] sm:$0xff]  ;;  %v661_v47 = vld [vmem:[%s2358_s12 + $0xdc8] sm:$0xff] }
 0x1cc   : > { %v663_v48 = vld [vmem:[%s2358_s12 + $0xdd8] sm:$0xff] }
 0x1ce   : > { %1827 = vmatpush1.bf16.xpose.msra.mxu0 %v1826_v58  ;;  %v674_v58 = vld [vmem:[%s2358_s12 + $0xe30] sm:$0xff] }
 0x1cf   : > { %1891 = vmatpush1.bf16.xpose.msra.mxu1 %v1890_v59  ;;  %1829 = vmatprep.subr.bf16.mxu0 %v1828_v60  ;;  %v2058_v59 = vld [vmem:[#allocation6 + $0x8] sm:$0xff]  ;;  %v1974_v0 = vpack.c.bf16 %v674_v58, %v672_v57  ;;  %v628_v57 = vld [vmem:[%s2358_s12 + $0xcc0] sm:$0xff]  ;;  %v630_v58 = vld [vmem:[%s2358_s12 + $0xcd0] sm:$0xff] }
 0x1d0   : > { %1893 = vmatprep.subr.bf16.mxu1 %v1892_v61  ;;  %v677_v60 = vld [vmem:[%s2358_s12 + $0xe48] sm:$0xff]  ;;  %v679_v61 = vld [vmem:[%s2358_s12 + $0xe58] sm:$0xff] }
 0x1d1   : > { %v1976_v1 = vpack.c.bf16 %v679_v61, %v677_v60  ;;  %v635_v60 = vld [vmem:[%s2358_s12 + $0xcf8] sm:$0xff]  ;;  %v692_v61 = vld [vmem:[%s2358_s12 + $0xec0] sm:$0xff] }
 0x1d6   : > { %1831 = vmatpush1.bf16.xpose.msra.mxu0 %v1830_v6  ;;  %v676_v6 = vld [vmem:[%s2358_s12 + $0xe40] sm:$0xff] }
 0x1d7   : > { %1895 = vmatpush1.bf16.xpose.msra.mxu1 %v1894_v7  ;;  %1833 = vmatprep.subr.bf16.mxu0 %v1832_v8  ;;  %v678_v7 = vld [vmem:[%s2358_s12 + $0xe50] sm:$0xff]  ;;  %v681_v8 = vld [vmem:[%s2358_s12 + $0xe68] sm:$0xff] }
 0x1d8   : > { %1897 = vmatprep.subr.bf16.mxu1 %v1896_v9  ;;  %v683_v9 = vld [vmem:[%s2358_s12 + $0xe78] sm:$0xff]  ;;  %v1978_v12 = vpack.c.bf16 %v678_v7, %v676_v6  ;;  %v634_v6 = vld [vmem:[%s2358_s12 + $0xcf0] sm:$0xff]  ;;  %v637_v7 = vld [vmem:[%s2358_s12 + $0xd08] sm:$0xff] }
 0x1d9   : > { %v1980_v13 = vpack.c.bf16 %v683_v9, %v681_v8  ;;  %v639_v8 = vld [vmem:[%s2358_s12 + $0xd18] sm:$0xff]  ;;  %v696_v9 = vld [vmem:[%s2358_s12 + $0xee0] sm:$0xff] }
 0x1de   : > { %1835 = vmatpush1.bf16.xpose.msra.mxu0 %v1834_v21  ;;  %v680_v21 = vld [vmem:[%s2358_s12 + $0xe60] sm:$0xff] }
 0x1df   : > { %1899 = vmatpush1.bf16.xpose.msra.mxu1 %v1898_v22  ;;  %1837 = vmatprep.subr.bf16.mxu0 %v1836_v24  ;;  %v682_v22 = vld [vmem:[%s2358_s12 + $0xe70] sm:$0xff]  ;;  %v685_v24 = vld [vmem:[%s2358_s12 + $0xe88] sm:$0xff] }
 0x1e0   : > { %1901 = vmatprep.subr.bf16.mxu1 %v1900_v25  ;;  %v687_v25 = vld [vmem:[%s2358_s12 + $0xe98] sm:$0xff]  ;;  %v1982_v28 = vpack.c.bf16 %v682_v22, %v680_v21  ;;  %v1938_v21 = vpack.c.bf16 %v638_v16, %v636_v15  ;;  %v1940_v22 = vpack.c.bf16 %v643_v20, %v641_v18 }
 0x1e1   : > { %v1984_v29 = vpack.c.bf16 %v687_v25, %v685_v24  ;;  %v640_v24 = vld [vmem:[%s2358_s12 + $0xd20] sm:$0xff]  ;;  %v642_v25 = vld [vmem:[%s2358_s12 + $0xd30] sm:$0xff] }
 0x1e6   : > { %1839 = vmatpush1.bf16.xpose.msra.mxu0 %v1838_v34  ;;  %v684_v34 = vld [vmem:[%s2358_s12 + $0xe80] sm:$0xff] }
 0x1e7   : > { %1903 = vmatpush1.bf16.xpose.msra.mxu1 %v1902_v17  ;;  %1905 = vmatprep.subr.bf16.mxu0 %v1904_v35  ;;  %v686_v17 = vld [vmem:[%s2358_s12 + $0xe90] sm:$0xff]  ;;  %v689_v35 = vld [vmem:[%s2358_s12 + $0xea8] sm:$0xff] }
 0x1e8   : > { %1969 = vmatprep.subr.bf16.mxu1 %v1968_v36  ;;  %v691_v36 = vld [vmem:[%s2358_s12 + $0xeb8] sm:$0xff]  ;;  %v1986_v40 = vpack.c.bf16 %v686_v17, %v684_v34  ;;  %v1946_v34 = vpack.c.bf16 %v646_v31, %v644_v30  ;;  %v1948_v17 = vpack.c.bf16 %v651_v33, %v649_v32 }
 0x1e9   : > { %v1988_v41 = vpack.c.bf16 %v691_v36, %v689_v35  ;;  %v648_v35 = vld [vmem:[%s2358_s12 + $0xd60] sm:$0xff]  ;;  %v650_v36 = vld [vmem:[%s2358_s12 + $0xd70] sm:$0xff] }
 0x1ed   : > { %1049 = vmatmul.mubr.f32.vlgmr.msra.gmra.mrb[4].mxu0 %v2795_v51 }
 0x1ee   : > { %1120 = vmatmul.mubr.f32.vlgmr.msra.gmra.mrb[4].mxu1 %v2795_v51  ;;  %1907 = vmatpush1.bf16.xpose.msra.mxu0 %v1906_v45  ;;  %v688_v45 = vld [vmem:[%s2358_s12 + $0xea0] sm:$0xff] }
 0x1ef   : > { %1909 = vmatprep.subr.bf16.mxu0 %v1908_v46  ;;  %1971 = vmatpush1.bf16.xpose.msra.mxu1 %v1970_v49  ;;  %v690_v46 = vld [vmem:[%s2358_s12 + $0xeb0] sm:$0xff]  ;;  %v693_v49 = vld [vmem:[%s2358_s12 + $0xec8] sm:$0xff] }
 0x1f0   : > { %1973 = vmatprep.subr.bf16.mxu1 %v1972_v50  ;;  %1190 = vmatprep.mubr.f32.mxu0 %v2058_v59  ;;  %v695_v50 = vld [vmem:[%s2358_s12 + $0xed8] sm:$0xff]  ;;  %v1990_v54 = vpack.c.bf16 %v690_v46, %v688_v45  ;;  %v1950_v46 = vpack.c.bf16 %v650_v36, %v648_v35 }
 0x1f1   : > { %1261 = vmatprep.mubr.f32.mxu1 %v2058_v59  ;;  %v1992_v56 = vpack.c.bf16 %v695_v50, %v693_v49  ;;  %v633_v59 = vld [vmem:[%s2358_s12 + $0xce8] sm:$0xff] }
 0x1f2   : > { %v1932_v2 = vpack.c.bf16 %v635_v60, %v633_v59  ;;  %v657_v59 = vld [vmem:[%s2358_s12 + $0xda8] sm:$0xff]  ;;  %v659_v60 = vld [vmem:[%s2358_s12 + $0xdb8] sm:$0xff] }
 0x1f6   : > { %1911 = vmatpush1.bf16.xpose.msra.mxu0 %v1910_v62  ;;  %v694_v62 = vld [vmem:[%s2358_s12 + $0xed0] sm:$0xff] }
 0x1f7   : > { %1913 = vmatprep.subr.bf16.mxu0 %v1912_v63  ;;  %1975 = vmatpush1.bf16.xpose.msra.mxu1 %v1974_v0  ;;  %v697_v63 = vld [vmem:[%s2358_s12 + $0xee8] sm:$0xff]  ;;  %v699_v0 = vld [vmem:[%s2358_s12 + $0xef8] sm:$0xff]  ;;  %v1994_v3 = vpack.c.bf16 %v694_v62, %v692_v61 }
 0x1f8   : > { %1977 = vmatprep.subr.bf16.mxu1 %v1976_v1  ;;  %v1930_v1 = vpack.c.bf16 %v630_v58, %v628_v57  ;;  %v1996_v4 = vpack.c.bf16 %v699_v0, %v697_v63  ;;  %v652_v57 = vld [vmem:[%s2358_s12 + $0xd80] sm:$0xff]  ;;  %v654_v58 = vld [vmem:[%s2358_s12 + $0xd90] sm:$0xff]  ;;  %v1339_v63 = vrot.slane %v1331_v55, %v2744_v39 }
 0x1f9   : > { %v1954_v62 = vpack.c.bf16 %v654_v58, %v652_v57 }
 0x1fe   : > { %1915 = vmatpush1.bf16.xpose.msra.mxu0 %v1914_v10  ;;  %v698_v10 = vld [vmem:[%s2358_s12 + $0xef0] sm:$0xff] }
 0x1ff   : > { %1917 = vmatprep.subr.bf16.mxu0 %v1916_v11  ;;  %1979 = vmatpush1.bf16.xpose.msra.mxu1 %v1978_v12  ;;  %v1934_v11 = vpack.c.bf16 %v634_v6, %v632_v5  ;;  %v1936_v12 = vpack.c.bf16 %v639_v8, %v637_v7  ;;  %v1960_v5 = vpack.c.bf16 %v663_v48, %v661_v47  ;;  %v660_v6 = vld [vmem:[%s2358_s12 + $0xdc0] sm:$0xff]  ;;  %v662_v7 = vld [vmem:[%s2358_s12 + $0xdd0] sm:$0xff]  ;;  %v665_v8 = vld [vmem:[%s2358_s12 + $0xde8] sm:$0xff] }
 0x200   : > { %1981 = vmatprep.subr.bf16.mxu1 %v1980_v13  ;;  %v1998_v13 = vpack.c.bf16 %v698_v10, %v696_v9  ;;  %v667_v9 = vld [vmem:[%s2358_s12 + $0xdf8] sm:$0xff]  ;;  %v1962_v10 = vpack.c.bf16 %v662_v7, %v660_v6 }
 0x206   : > { %1919 = vmatpush1.bf16.xpose.msra.mxu0 %v1918_v26  ;;  %v645_v26 = vld [vmem:[%s2358_s12 + $0xd48] sm:$0xff] }
 0x207   : > { %1921 = vmatprep.subr.bf16.mxu0 %v1920_v27  ;;  %1983 = vmatpush1.bf16.xpose.msra.mxu1 %v1982_v28  ;;  %v647_v27 = vld [vmem:[%s2358_s12 + $0xd58] sm:$0xff]  ;;  %v1942_v28 = vpack.c.bf16 %v642_v25, %v640_v24 }
 0x208   : > { %1985 = vmatprep.subr.bf16.mxu1 %v1984_v29  ;;  %v1944_v29 = vpack.c.bf16 %v647_v27, %v645_v26 }
 0x20e   : > { %1923 = vmatpush1.bf16.xpose.msra.mxu0 %v1922_v37 }
 0x20f   : > { %1925 = vmatprep.subr.bf16.mxu0 %v1924_v38  ;;  %1987 = vmatpush1.bf16.xpose.msra.mxu1 %v1986_v40  ;;  %v653_v38 = vld [vmem:[%s2358_s12 + $0xd88] sm:$0xff]  ;;  %v655_v40 = vld [vmem:[%s2358_s12 + $0xd98] sm:$0xff] }
 0x210   : > { %1989 = vmatprep.subr.bf16.mxu1 %v1988_v41  ;;  %v1952_v50 = vpack.c.bf16 %v655_v40, %v653_v38 }
 0x216   : > { %1927 = vmatpush1.bf16.xpose.msra.mxu0 %v1926_v52 }
 0x217   : > { %1929 = vmatprep.subr.bf16.mxu0 %v1928_v53  ;;  %1991 = vmatpush1.bf16.xpose.msra.mxu1 %v1990_v54 }
 0x218   : > { %1993 = vmatprep.subr.bf16.mxu1 %v1992_v56 }
 0x21e   : > { %1931 = vmatpush1.bf16.xpose.msra.mxu0 %v1930_v1  ;;  %v1956_v1 = vpack.c.bf16 %v659_v60, %v657_v59 }
 0x21f   : > { %1933 = vmatprep.subr.bf16.mxu0 %v1932_v2  ;;  %1995 = vmatpush1.bf16.xpose.msra.mxu1 %v1994_v3  ;;  %v656_v3 = vld [vmem:[%s2358_s12 + $0xda0] sm:$0xff] }
 0x220   : > { %1997 = vmatprep.subr.bf16.mxu1 %v1996_v4  ;;  %v658_v4 = vld [vmem:[%s2358_s12 + $0xdb0] sm:$0xff] }
 0x221   : > { %v1958_v55 = vpack.c.bf16 %v658_v4, %v656_v3 }
 0x226   : > { %1935 = vmatpush1.bf16.xpose.msra.mxu0 %v1934_v11  ;;  %v1964_v11 = vpack.c.bf16 %v667_v9, %v665_v8 }
 0x227   : > { %1937 = vmatprep.subr.bf16.mxu0 %v1936_v12  ;;  %1999 = vmatpush1.bf16.xpose.msra.mxu1 %v1998_v13  ;;  %v664_v12 = vld [vmem:[%s2358_s12 + $0xde0] sm:$0xff]  ;;  %v666_v13 = vld [vmem:[%s2358_s12 + $0xdf0] sm:$0xff] }
 0x228   : > { %v1966_v15 = vpack.c.bf16 %v666_v13, %v664_v12 }
 0x22e   : > { %1939 = vmatpush1.bf16.xpose.msra.mxu0 %v1938_v21  ;;  %1262 = vmatmul.mubr.f32.vlgmr.msra.gmra.mrb[6].mxu1 %v2795_v51 }
 0x22f   : > { %1941 = vmatprep.subr.bf16.mxu0 %v1940_v22 }
 0x236   : > { %1943 = vmatpush1.bf16.xpose.msra.mxu0 %v1942_v28 }
 0x237   : > { %1945 = vmatprep.subr.bf16.mxu0 %v1944_v29 }
 0x23e   : > { %1947 = vmatpush1.bf16.xpose.msra.mxu0 %v1946_v34 }
 0x23f   : > { %1949 = vmatprep.subr.bf16.mxu0 %v1948_v17 }
 0x240   : > { %v908_v37 = vpop.f32.mrb[2].mxu0 }
 0x241   : > { %v1273_v41 = vadd.f32 %v2730_v23, %v908_v37  ;;  %v979_v42 = vpop.f32.mrb[2].mxu1  ;;  %v910_v43 = vpop.f32.mrb[3].mxu0 }
 0x242   : > { %v1275_v14 = vadd.f32 %v2730_v23, %v979_v42  ;;  %v1274_v44 = vadd.f32 %v2730_v23, %v910_v43  ;;  %v981_v45 = vpop.f32.mrb[3].mxu1 }
 0x243   : > { %v1276_v49 = vadd.f32 %v2730_v23, %v981_v45 }
 0x244   : > { %v1301_v52 = vcombine.low %v1273_v41, %v1274_v44 }
 0x245   : > { %v1302_v53 = vcombine.low %v1275_v14, %v1276_v49 }
 0x246   : > { %v1323_v54 = vrot.slane %v1301_v52, %v2744_v39  ;;  %1951 = vmatpush1.bf16.xpose.msra.mxu0 %v1950_v46 }
 0x247   : > { %v1330_v56 = vrot.slane %v1302_v53, %v2744_v39  ;;  %1953 = vmatprep.subr.bf16.mxu0 %v1952_v50 }
 0x249   : > { %v1332_v61 = vcombine.low %v1323_v54, %v1330_v56 }
 0x24b   : > { %v1346_v0 = vrot.slane %v1332_v61, %v2744_v39 }
 0x24d   : > { %v1347_v2 = vcombine.low %v1339_v63, %v1346_v0 }
 0x24e   : > { %1955 = vmatpush1.bf16.xpose.msra.mxu0 %v1954_v62 }
 0x24f   : > { %1957 = vmatprep.subr.bf16.mxu0 %v1956_v1  ;;  %1398 = vst [vmem:[%s2888_s30] sm:$0xff] %v1347_v2 }
 0x256   : > { %1959 = vmatpush1.bf16.xpose.msra.mxu0 %v1958_v55 }
 0x257   : > { %1961 = vmatprep.subr.bf16.mxu0 %v1960_v5 }
 0x25e   : > { %1963 = vmatpush1.bf16.xpose.msra.mxu0 %v1962_v10 }
 0x25f   : > { %1965 = vmatprep.subr.bf16.mxu0 %v1964_v11 }
 0x266   : > { %1967 = vmatpush1.bf16.xpose.msra.mxu0 %v1966_v15 }
 0x26d   : > { %1191 = vmatmul.mubr.f32.vlgmr.msra.gmra.mrb[6].mxu0 %v2795_v51 }
 0x2c0   : > { %v1050_v16 = vpop.f32.mrb[4].mxu0 }
 0x2c1   : > { %v1277_v18 = vadd.f32 %v2730_v23, %v1050_v16  ;;  %v1121_v20 = vpop.f32.mrb[4].mxu1  ;;  %v1052_v21 = vpop.f32.mrb[5].mxu0 }
 0x2c2   : > { %v1279_v22 = vadd.f32 %v2730_v23, %v1121_v20  ;;  %v1278_v24 = vadd.f32 %v2730_v23, %v1052_v21  ;;  %v1123_v25 = vpop.f32.mrb[5].mxu1 }
 0x2c3   : > { %v1280_v26 = vadd.f32 %v2730_v23, %v1123_v25 }
 0x2c4   : > { %v1348_v27 = vcombine.low %v1277_v18, %v1278_v24 }
 0x2c5   : > { %v1349_v28 = vcombine.low %v1279_v22, %v1280_v26 }
 0x2c6   : > { %v1357_v29 = vrot.slane %v1348_v27, %v2744_v39 }
 0x2c7   : > { %v1364_v51 = vrot.slane %v1349_v28, %v2744_v39 }
 0x2c9   : > { %v1379_v30 = vcombine.low %v1357_v29, %v1364_v51 }
 0x2cb   : > { %v1387_v42 = vrot.slane %v1379_v30, %v2744_v39 }
 0x301   : > { %v1263_v31 = vpop.f32.mrb[6].mxu1 }
 0x302   : > { %v1265_v32 = vpop.f32.mrb[7].mxu1  ;;  %v1283_v34 = vadd.f32 %v2730_v23, %v1263_v31 }
 0x304   : > { %v1378_v38 = vrot.slane %v1283_v34, %v2744_v39 }
 0x340   : > { %v1192_v33 = vpop.f32.mrb[6].mxu0 }
 0x341   : > { %v1281_v17 = vadd.f32 %v2730_v23, %v1192_v33  ;;  %v1194_v35 = vpop.f32.mrb[7].mxu0 }
 0x342   : > { %v1282_v36 = vadd.f32 %v2730_v23, %v1194_v35 }
 0x344   : > { %v1350_v37 = vcombine.low %v1281_v17, %v1282_v36 }
 0x346   : > { %v1371_v40 = vrot.slane %v1350_v37, %v2744_v39 }
 0x348   : > { %v1380_v41 = vcombine.low %v1371_v40, %v1378_v38 }
 0x34a   : > { %v1394_v43 = vrot.slane %v1380_v41, %v2744_v39 }
 0x34c   : > { %v1395_v14 = vcombine.low %v1387_v42, %v1394_v43 }
 0x34e   : > { %1403 = vst.msk [vmem:[%s2888_s30 + $0x8] sm:$0x7f] %vm1401_vm0, %v1395_v14 }
 0x34f   : > { %2128 = shalt.err (!%p2125_p13)
}
 0x350   : > { %s2129_s5 = scalar_lea.hbm %s2919_s18, 240  ;;  %s2133_s8 = scalar_lea.hbm %s2967_s3, 480 }
 0x351   : > { %p2130_p2 = scmp.ne.s32.totalorder %s2919_s18, %s2129_s5  ;;  %p2134_p5 = scmp.lt.u32.totalorder %s2919_s18, %s2967_s3 }
 0x352   : > { %p2135_p8 = scmp.lt.u32.totalorder %s2133_s8, %s2129_s5  ;;  %p2137_p1 = scmp.lt.u32.totalorder %s2129_s5, %s2919_s18 }
 0x353   : > { %p2131_p12 = pnand %p2130_p2, %p2983_p10 }
 0x354   : > { %p2136_p9 = por %p2135_p8, %p2134_p5 }
 0x355   : > { %p2132_p3 = pneg %p2131_p12 }
 0x356   : > { %p2138_p7 = por %p2137_p1, %p2136_p9 }
 0x358   : > { %p2139_p4 = pnand %p2138_p7, %p2132_p3 }
 0x35a   : > { %2142 = shalt.err (!%p2139_p4)
}
 0x35b   : > { %2008 = dma.vmem_to_hbm [thread:$0]  (%p2983_p10), %s2921_s6, 240, %s2919_s18, %s1405_s2  }
 0x35c PF: > { %s1431_s12 = sand.u32 1, %s2173_s14   ;;  %p2984_p6 = scmp.ne.s32.totalorder %s2975_s26, 0 }
 0x35d   : > { %s1432_s24 = scalar_lea.sflag [#allocation5], %s1431_s12 }
 0x35e   : > { %p2015_p11 = pnand %p1502_p0, %p2984_p6 }
 0x360   : > { %2168 = dma.done.wait (!%p2015_p11), %s1432_s24, 240  }
 0x361   : > { %2170 = vsyncadd (!%p2015_p11), %s1432_s24, 4294967056  ;;  %p18_p13 = scmp.ge.s32.totalorder %s2241_s19, 4   ;;  %s2985_s14 = smov %s2177_s15 }
 0x362   : > { %s2986_s15 = smov %s2181_s16  ;;  %s2987_s16 = smov %s2253_s22 }
 0x363   : > { %s2988_s17 = smov %s2241_s19  ;;  %20 = sbr.rel (!%p18_p13) target bundleno = 8 (0x8), region = 81 }
 0x36a   :  { %1437 = vsyncpa [#allocation4], 1 }
 0x36b   :  { %1439 = vsyncpa [#allocation4 + $0x1], 1 }
 0x36c   :  { %1440 = vsyncpa [#allocation7], 1 }
 0x36d   :  { %1441 = vsyncpa [#allocation5], 1 }
 0x36e   :  { %1443 = vsyncpa [#allocation5 + $0x1], 1 }

</bundles_post_ra>
